<compile_context>
chip_gen: v7x
topology: tpu7x:2x2x1
jax: 0.10.0
libtpu: 0.0.40
codegen_flags: <defaults>
</compile_context>

<pallas_src>
import functools
import math

import jax
import jax.numpy as jnp
from jax.experimental import pallas as pl
from jax.experimental.pallas import tpu as pltpu


# --------------------------------------------------------------------------
# Kernel 1: attentive statistics pooling, one batch element per grid step.
# --------------------------------------------------------------------------
def attn_pool_kernel(x_ref, w1_ref, b1_ref, w2_ref, b2_ref, out_ref, *, var_clamp):
    """x_ref:(1,L,C) w1:(C,B) b1:(1,B) w2:(B,C) b2:(1,C) out:(1,2,C)."""
    x = x_ref[0]                                                     # (L, C)

    # linear1 (1x1 conv) + tanh, then linear2 (1x1 conv): two MXU matmuls.
    h = jnp.tanh(jnp.dot(x, w1_ref[...],
                         preferred_element_type=jnp.float32) + b1_ref[...])   # (L, B)
    s = jnp.dot(h, w2_ref[...],
                preferred_element_type=jnp.float32) + b2_ref[...]             # (L, C)

    # Softmax over the frame axis (L) fused with the weighted statistics.
    s_max = jnp.max(s, axis=0, keepdims=True)                        # (1, C)
    e = jnp.exp(s - s_max)                                           # (L, C)
    inv_denom = 1.0 / jnp.sum(e, axis=0, keepdims=True)              # (1, C)

    xf = x.astype(jnp.float32)
    mean = jnp.sum(e * xf, axis=0, keepdims=True) * inv_denom        # (1, C)
    mean_sq = jnp.sum(e * (xf * xf), axis=0, keepdims=True) * inv_denom
    var = mean_sq - mean * mean
    std = jnp.sqrt(jnp.maximum(var, var_clamp))                      # (1, C)

    out_ref[...] = jnp.concatenate([mean, std], axis=0)[None].astype(out_ref.dtype)


# --------------------------------------------------------------------------
# Kernel 2: BN1 -> Linear -> BN2, contraction (3072) tiled with accumulator.
# --------------------------------------------------------------------------
def head_kernel(p_ref, g1_ref, be1_ref, w3_ref, b3_ref, g2_ref, be2_ref,
                o_ref, acc_ref, *, eps):
    """p:(N,TK) g1/be1:(1,TK) w3:(TK,E) b3/g2/be2:(1,E) o:(N,E) acc:(N,E)f32."""
    k = pl.program_id(0)

    @pl.when(k == 0)
    def _init():
        acc_ref[...] = jnp.zeros_like(acc_ref)

    p = p_ref[...].astype(jnp.float32)                               # (N, TK)
    # BatchNorm1d (training-mode batch stats over N); stats are per-feature,
    # hence fully local to this feature tile.
    mu = jnp.mean(p, axis=0, keepdims=True)
    var = jnp.mean((p - mu) ** 2, axis=0, keepdims=True)
    xn = (p - mu) * jax.lax.rsqrt(var + eps) * g1_ref[...] + be1_ref[...]

    # Linear: accumulate the K-tiled contraction into the resident f32 block.
    acc_ref[...] += jnp.dot(xn, w3_ref[...], preferred_element_type=jnp.float32)

    @pl.when(k == pl.num_programs(0) - 1)
    def _finalize():
        z = acc_ref[...] + b3_ref[...]                               # (N, E)
        mu2 = jnp.mean(z, axis=0, keepdims=True)
        var2 = jnp.mean((z - mu2) ** 2, axis=0, keepdims=True)
        o_ref[...] = ((z - mu2) * jax.lax.rsqrt(var2 + eps)
                      * g2_ref[...] + be2_ref[...]).astype(o_ref.dtype)


# --------------------------------------------------------------------------
# Wrapper
# --------------------------------------------------------------------------
def dencode_forward(x_ncl, w1, b1, w2, b2, g1, be1, w3, b3, g2, be2,
                    *, eps=1e-5, var_clamp=1e-9, tk=768):
    """x_ncl: (N, 1536, L). Weights in PyTorch layout:
       w1:(128,1536) b1:(128,)  w2:(1536,128) b2:(1536,)
       g1/be1:(3072,)  w3:(192,3072) b3:(192,)  g2/be2:(192,)."""
    n, c, l = x_ncl.shape
    bott = w1.shape[0]
    embd = w3.shape[0]
    feat = 2 * c
    assert feat % tk == 0

    # Layout glue (plain XLA): channels-last so channels map onto lanes.
    x_nlc = jnp.transpose(x_ncl, (0, 2, 1))        # (N, L, C)
    w1_cb = jnp.transpose(w1)                       # (C, B)
    w2_bc = jnp.transpose(w2)                       # (B, C)
    w3_fe = jnp.transpose(w3)                       # (F, E)

    pool_cost = pl.CostEstimate(
        flops=int(4 * n * l * c * bott + 8 * n * l * c),
        transcendentals=int(n * l * (bott + c)),
        bytes_accessed=int(4 * (n * l * c + 2 * c * bott + 2 * n * c)),
    )
    pooled3 = pl.pallas_call(
        functools.partial(attn_pool_kernel, var_clamp=var_clamp),
        out_shape=jax.ShapeDtypeStruct((n, 2, c), jnp.float32),
        grid=(n,),
        in_specs=[
            pl.BlockSpec((1, l, c), lambda i: (i, 0, 0)),
            pl.BlockSpec((c, bott), lambda i: (0, 0)),
            pl.BlockSpec((1, bott), lambda i: (0, 0)),
            pl.BlockSpec((bott, c), lambda i: (0, 0)),
            pl.BlockSpec((1, c), lambda i: (0, 0)),
        ],
        out_specs=pl.BlockSpec((1, 2, c), lambda i: (i, 0, 0)),
        compiler_params=pltpu.CompilerParams(
            dimension_semantics=("parallel",)),
        cost_estimate=pool_cost,
    )(x_nlc, w1_cb, b1.reshape(1, bott), w2_bc, b2.reshape(1, c))

    # (N, 2, C) -> (N, 3072): row = [attentive mean (C), attentive std (C)],
    # exactly torch.cat([mean, std], dim=1).
    pooled = pooled3.reshape(n, feat)

    head_cost = pl.CostEstimate(
        flops=int(2 * n * feat * embd + 12 * n * feat),
        transcendentals=int(feat + embd),
        bytes_accessed=int(4 * (n * feat + feat * embd + n * embd)),
    )
    out = pl.pallas_call(
        functools.partial(head_kernel, eps=eps),
        out_shape=jax.ShapeDtypeStruct((n, embd), jnp.float32),
        grid=(feat // tk,),
        in_specs=[
            pl.BlockSpec((n, tk), lambda k: (0, k)),
            pl.BlockSpec((1, tk), lambda k: (0, k)),
            pl.BlockSpec((1, tk), lambda k: (0, k)),
            pl.BlockSpec((tk, embd), lambda k: (k, 0)),
            pl.BlockSpec((1, embd), lambda k: (0, 0)),
            pl.BlockSpec((1, embd), lambda k: (0, 0)),
            pl.BlockSpec((1, embd), lambda k: (0, 0)),
        ],
        out_specs=pl.BlockSpec((n, embd), lambda k: (0, 0)),
        scratch_shapes=[pltpu.VMEM((n, embd), jnp.float32)],
        compiler_params=pltpu.CompilerParams(
            dimension_semantics=("arbitrary",)),
        cost_estimate=head_cost,
    )(pooled, g1.reshape(1, feat), be1.reshape(1, feat),
      w3_fe, b3.reshape(1, embd), g2.reshape(1, embd), be2.reshape(1, embd))

    return out


# --------------------------------------------------------------------------
# Pure-JAX reference of the PyTorch Dencode forward (training-mode BN stats).
# --------------------------------------------------------------------------
def dencode_reference(x_ncl, w1, b1, w2, b2, g1, be1, w3, b3, g2, be2, eps=1e-5):
    a = jnp.tanh(jnp.einsum('oc,ncl->nol', w1, x_ncl) + b1[None, :, None])
    s = jnp.einsum('oc,ncl->nol', w2, a) + b2[None, :, None]
    alpha = jax.nn.softmax(s, axis=2)
    mean = jnp.sum(alpha * x_ncl, axis=2)
    residuals = jnp.sum(alpha * x_ncl ** 2, axis=2) - mean ** 2
    std = jnp.sqrt(jnp.maximum(residuals, 1e-9))
    pooled = jnp.concatenate([mean, std], axis=1)                    # (N, 3072)

    mu1 = jnp.mean(pooled, axis=0, keepdims=True)
    var1 = jnp.mean((pooled - mu1) ** 2, axis=0, keepdims=True)
    h = (pooled - mu1) * jax.lax.rsqrt(var1 + eps) * g1 + be1

    z = h @ w3.T + b3                                                # (N, 192)
    mu2 = jnp.mean(z, axis=0, keepdims=True)
    var2 = jnp.mean((z - mu2) ** 2, axis=0, keepdims=True)
    return (z - mu2) * jax.lax.rsqrt(var2 + eps) * g2 + be2


if __name__ == "__main__":
    # Module-implied dims: in_dim=1536, bottleneck=128, pooled=3072, embd=192.
    N, C_IN, L = 4, 1536, 16
    BOTT, EMBD = 128, 192
    FEAT = 2 * C_IN

    key = jax.random.PRNGKey(0)
    ks = jax.random.split(key, 11)

    def uni(k, shape, bound):
        return jax.random.uniform(k, shape, jnp.float32, -bound, bound)

    x = jax.random.normal(ks[0], (N, C_IN, L), jnp.float32)

    # Conv1d / Linear default init bounds: U(-1/sqrt(fan_in), 1/sqrt(fan_in)).
    w1 = uni(ks[1], (BOTT, C_IN), 1.0 / math.sqrt(C_IN))
    b1 = uni(ks[2], (BOTT,), 1.0 / math.sqrt(C_IN))
    w2 = uni(ks[3], (C_IN, BOTT), 1.0 / math.sqrt(BOTT))
    b2 = uni(ks[4], (C_IN,), 1.0 / math.sqrt(BOTT))
    g1 = 1.0 + 0.1 * jax.random.normal(ks[5], (FEAT,), jnp.float32)
    be1 = 0.1 * jax.random.normal(ks[6], (FEAT,), jnp.float32)
    w3 = uni(ks[7], (EMBD, FEAT), 1.0 / math.sqrt(FEAT))
    b3 = uni(ks[8], (EMBD,), 1.0 / math.sqrt(FEAT))
    g2 = 1.0 + 0.1 * jax.random.normal(ks[9], (EMBD,), jnp.float32)
    be2 = 0.1 * jax.random.normal(ks[10], (EMBD,), jnp.float32)

    out = dencode_forward(x, w1, b1, w2, b2, g1, be1, w3, b3, g2, be2)
    out = jax.block_until_ready(out)

    ref = dencode_reference(x, w1, b1, w2, b2, g1, be1, w3, b3, g2, be2)
    assert out.shape == (N, EMBD)
    max_err = float(jnp.max(jnp.abs(out - ref)))
    assert jnp.allclose(out, ref, atol=2e-3, rtol=2e-3), f"mismatch, max abs err={max_err}"

    print("KERNEL_OK")
</pallas_src>

<mosaic_0001>
module attributes {stable_mosaic.version = 11 : i64} {
  func.func @attn_pool_kernel(%arg0: i32, %arg1: memref<1x16x1536xf32, #tpu.memory_space<vmem>>, %arg2: memref<1536x128xf32, #tpu.memory_space<vmem>>, %arg3: memref<1x128xf32, #tpu.memory_space<vmem>>, %arg4: memref<128x1536xf32, #tpu.memory_space<vmem>>, %arg5: memref<1x1536xf32, #tpu.memory_space<vmem>>, %arg6: memref<1x2x1536xf32, #tpu.memory_space<vmem>>) attributes {dimension_semantics = [#tpu.dimension_semantics<parallel>], iteration_bounds = array<i64: 4>, scalar_prefetch = 0 : i64, scratch_operands = 0 : i64, tpu.core_type = #tpu.core_type<tc>, window_params = [{transform_indices = @transform_0, window_bounds = array<i64: 1, 16, 1536>}, {pipeline_mode = #tpu.pipeline_mode<synchronous>, transform_indices = @transform_1, window_bounds = array<i64: 1536, 128>}, {pipeline_mode = #tpu.pipeline_mode<synchronous>, transform_indices = @transform_2, window_bounds = array<i64: 1, 128>}, {pipeline_mode = #tpu.pipeline_mode<synchronous>, transform_indices = @transform_3, window_bounds = array<i64: 128, 1536>}, {pipeline_mode = #tpu.pipeline_mode<synchronous>, transform_indices = @transform_4, window_bounds = array<i64: 1, 1536>}, {transform_indices = @transform_5, window_bounds = array<i64: 1, 2, 1536>}]} {
    %c0 = arith.constant 0 : index
    %c0_0 = arith.constant 0 : index
    %c0_1 = arith.constant 0 : index
    %0 = vector.load %arg1[%c0, %c0_0, %c0_1] : memref<1x16x1536xf32, #tpu.memory_space<vmem>>, vector<1x16x1536xf32>
    %1 = vector.shape_cast %0 : vector<1x16x1536xf32> to vector<16x1536xf32>
    %c0_2 = arith.constant 0 : index
    %c0_3 = arith.constant 0 : index
    %2 = vector.load %arg2[%c0_2, %c0_3] : memref<1536x128xf32, #tpu.memory_space<vmem>>, vector<1536x128xf32>
    %cst = arith.constant dense<0.000000e+00> : vector<16x128xf32>
    %3 = tpu.matmul %1, %2, %cst {dimension_numbers = #tpu.dot_dimension_numbers<[1], [0], [0], [1], [0, 0, 1, 1], [], []>} : vector<16x1536xf32>, vector<1536x128xf32>, vector<16x128xf32> -> vector<16x128xf32>
    %c0_4 = arith.constant 0 : index
    %c0_5 = arith.constant 0 : index
    %4 = vector.load %arg3[%c0_4, %c0_5] : memref<1x128xf32, #tpu.memory_space<vmem>>, vector<1x128xf32>
    %5 = vector.broadcast %4 : vector<1x128xf32> to vector<16x128xf32>
    %6 = arith.addf %3, %5 : vector<16x128xf32>
    %7 = math.tanh %6 : vector<16x128xf32>
    %c0_6 = arith.constant 0 : index
    %c0_7 = arith.constant 0 : index
    %8 = vector.load %arg4[%c0_6, %c0_7] : memref<128x1536xf32, #tpu.memory_space<vmem>>, vector<128x1536xf32>
    %cst_8 = arith.constant dense<0.000000e+00> : vector<16x1536xf32>
    %9 = tpu.matmul %7, %8, %cst_8 {dimension_numbers = #tpu.dot_dimension_numbers<[1], [0], [0], [1], [0, 0, 1, 1], [], []>} : vector<16x128xf32>, vector<128x1536xf32>, vector<16x1536xf32> -> vector<16x1536xf32>
    %c0_9 = arith.constant 0 : index
    %c0_10 = arith.constant 0 : index
    %10 = vector.load %arg5[%c0_9, %c0_10] : memref<1x1536xf32, #tpu.memory_space<vmem>>, vector<1x1536xf32>
    %11 = vector.broadcast %10 : vector<1x1536xf32> to vector<16x1536xf32>
    %12 = arith.addf %9, %11 : vector<16x1536xf32>
    %cst_11 = arith.constant dense<0xFF800000> : vector<1536xf32>
    %13 = vector.multi_reduction <maximumf>, %12, %cst_11 [0] : vector<16x1536xf32> to vector<1536xf32>
    %14 = vector.shape_cast %13 : vector<1536xf32> to vector<1x1536xf32>
    %15 = vector.broadcast %14 : vector<1x1536xf32> to vector<16x1536xf32>
    %16 = arith.subf %12, %15 : vector<16x1536xf32>
    %17 = math.exp %16 : vector<16x1536xf32>
    %cst_12 = arith.constant dense<0.000000e+00> : vector<1536xf32>
    %18 = vector.multi_reduction <add>, %17, %cst_12 [0] : vector<16x1536xf32> to vector<1536xf32>
    %19 = vector.shape_cast %18 : vector<1536xf32> to vector<1x1536xf32>
    %cst_13 = arith.constant 1.000000e+00 : f32
    %20 = vector.broadcast %cst_13 : f32 to vector<1x1536xf32>
    %21 = arith.divf %20, %19 : vector<1x1536xf32>
    %22 = arith.mulf %17, %1 : vector<16x1536xf32>
    %cst_14 = arith.constant dense<0.000000e+00> : vector<1536xf32>
    %23 = vector.multi_reduction <add>, %22, %cst_14 [0] : vector<16x1536xf32> to vector<1536xf32>
    %24 = vector.shape_cast %23 : vector<1536xf32> to vector<1x1536xf32>
    %25 = arith.mulf %24, %21 : vector<1x1536xf32>
    %26 = arith.mulf %1, %1 : vector<16x1536xf32>
    %27 = arith.mulf %17, %26 : vector<16x1536xf32>
    %cst_15 = arith.constant dense<0.000000e+00> : vector<1536xf32>
    %28 = vector.multi_reduction <add>, %27, %cst_15 [0] : vector<16x1536xf32> to vector<1536xf32>
    %29 = vector.shape_cast %28 : vector<1536xf32> to vector<1x1536xf32>
    %30 = arith.mulf %29, %21 : vector<1x1536xf32>
    %31 = arith.mulf %25, %25 : vector<1x1536xf32>
    %32 = arith.subf %30, %31 : vector<1x1536xf32>
    %cst_16 = arith.constant 9.99999971E-10 : f32
    %33 = vector.broadcast %cst_16 : f32 to vector<1x1536xf32>
    %34 = arith.maximumf %32, %33 : vector<1x1536xf32>
    %35 = math.sqrt %34 : vector<1x1536xf32>
    %36 = tpu.concatenate %25, %35 in 0 : vector<1x1536xf32>, vector<1x1536xf32> -> vector<2x1536xf32>
    %37 = vector.shape_cast %36 : vector<2x1536xf32> to vector<1x2x1536xf32>
    %c0_17 = arith.constant 0 : index
    %c0_18 = arith.constant 0 : index
    %c0_19 = arith.constant 0 : index
    %38 = vector.load %arg6[%c0_17, %c0_18, %c0_19] : memref<1x2x1536xf32, #tpu.memory_space<vmem>>, vector<1x2x1536xf32>
    tpu.vector_store %arg6[%c0_17, %c0_18, %c0_19], %37 {strides = array<i32>} : memref<1x2x1536xf32, #tpu.memory_space<vmem>>, vector<1x2x1536xf32>,
    return
  }
  func.func @transform_0(%arg0: i32) -> (i32, i32, i32) {
    %c0_i32 = arith.constant 0 : i32
    %c0_i32_0 = arith.constant 0 : i32
    %c0_i32_1 = arith.constant 0 : i32
    return %arg0, %c0_i32, %c0_i32_0 : i32, i32, i32
  }
  func.func @transform_1(%arg0: i32) -> (i32, i32) {
    %c0_i32 = arith.constant 0 : i32
    %c0_i32_0 = arith.constant 0 : i32
    %c0_i32_1 = arith.constant 0 : i32
    return %c0_i32, %c0_i32_0 : i32, i32
  }
  func.func @transform_2(%arg0: i32) -> (i32, i32) {
    %c0_i32 = arith.constant 0 : i32
    %c0_i32_0 = arith.constant 0 : i32
    %c0_i32_1 = arith.constant 0 : i32
    return %c0_i32, %c0_i32_0 : i32, i32
  }
  func.func @transform_3(%arg0: i32) -> (i32, i32) {
    %c0_i32 = arith.constant 0 : i32
    %c0_i32_0 = arith.constant 0 : i32
    %c0_i32_1 = arith.constant 0 : i32
    return %c0_i32, %c0_i32_0 : i32, i32
  }
  func.func @transform_4(%arg0: i32) -> (i32, i32) {
    %c0_i32 = arith.constant 0 : i32
    %c0_i32_0 = arith.constant 0 : i32
    %c0_i32_1 = arith.constant 0 : i32
    return %c0_i32, %c0_i32_0 : i32, i32
  }
  func.func @transform_5(%arg0: i32) -> (i32, i32, i32) {
    %c0_i32 = arith.constant 0 : i32
    %c0_i32_0 = arith.constant 0 : i32
    %c0_i32_1 = arith.constant 0 : i32
    return %arg0, %c0_i32, %c0_i32_0 : i32, i32, i32
  }
}

</mosaic_0001>

<bundles_post_ra>
// kernel: tpu_custom_call.1
= control target key start
LH: loop header
LB: loop body
LE: loop exit
PB: predicated region body
PF: predicated region fallthrough
CT: control target
= control target key end

     0   :  { %10 = vsyncpa [#allocation3], 0  ;;  %s4542_s0 = inlined_call_operand.hbm [shape: f32[4,16,1536], index: 0, kind: input, shape index: {}]   ;;  %s4543_s1 = inlined_call_operand.hbm [shape: f32[1536,128], index: 1, kind: input, shape index: {}]   ;;  %s4544_s2 = inlined_call_operand.vmem [shape: f32[1,128], index: 2, kind: input, shape index: {}]   ;;  %s4545_s3 = inlined_call_operand.hbm [shape: f32[128,1536], index: 3, kind: input, shape index: {}]   ;;  %s4546_s4 = inlined_call_operand.vmem [shape: f32[1,1536], index: 4, kind: input, shape index: {}]   ;;  %s4547_s5 = inlined_call_operand.hbm [shape: f32[4,2,1536], index: 5, kind: output, shape index: {}]  }
   0x1   :  { %12 = vsyncpa [#allocation3 + $0x1], 0 }
   0x2   :  { %13 = vsyncpa [#allocation6], 0 }
   0x3   :  { %14 = vsyncpa [#allocation4], 0 }
   0x4   :  { %16 = vsyncpa [#allocation4 + $0x1], 0  ;;  %s3524_s18 = smov 0   ;;  %s3526_s19 = smov 0  }
   0x5   :  { %s3528_s20 = smov 0   ;;  %s3530_s21 = smov 0  }
   0x6 LB: > { %s3545_s22 = sadd.s32 4294967295, %s3482_s21   ;;  %s2499_s23 = sadd.s32 4294967294, %s3482_s21   ;;  %s3482_s21 = sphi %s3530_s21, %s4632_s21   ;;  %s3478_s20 = sphi %s3528_s20, %s4631_s20   ;;  %s3474_s19 = sphi %s3526_s19, %s4630_s19   ;;  %s3470_s18 = sphi %s3524_s18, %s4629_s18  }
   0x7   : > { %p42_p0 = scmp.ne.s32.totalorder %s3474_s19, %s3470_s18  ;;  %p4548_p1 = scmp.eq.s32.totalorder %s3545_s22, 0 }
   0x8   : > { %p156_p3 = scmp.eq.s32.totalorder %s2499_s23, 3  ;;  %p2500_p5 = scmp.ge.s32.totalorder %s3482_s21, 1 }
   0x9   : > { %p3554_p4 = por %p4548_p1, %p42_p0  ;;  %p163_p7 = scmp.lt.s32.totalorder %s3482_s21, 5 }
   0xa   : > { %p3559_p6 = por %p156_p3, %p42_p0  ;;  %s3484_s27 = smov [#allocation5]  }
   0xb   : > { %s4565_s24 = scalar_select %p3554_p4, 1, 0 }
   0xc   : > { %s4566_s25 = scalar_select %p3559_p6, 1, 0 }
   0xd   : > { %p3564_p8 = pnand %p2500_p5, %p163_p7  ;;  %s175_s28 = sshll.u32 %s3484_s27, 4  ;;  %s176_s28 = int_to_ptr.vmem [resolvable:$true] %s175_s28 }
   0xe   : > { %s3485_s30 = smov [#allocation7]   ;;  %s3326_s9 = scalar_lea.hbm %s4543_s1, 24576 }
   0xf   : > { %s4567_s26 = scalar_select %p3564_p8, 1, 0 }
  0x10   : > { %p3141_p9 = pneg %p3564_p8  ;;  %s191_s6 = sshll.u32 %s3485_s30, 4  ;;  %s3576_s6 = int_to_ptr.vmem [resolvable:$true] %s191_s6 }
  0x11   : > { %p3327_p11 = scmp.ne.s32.totalorder %s4543_s1, %s3326_s9  ;;  %p3333_p3 = scmp.lt.u32.totalorder %s3326_s9, %s4543_s1 }
  0x12   : > { %p3572_p10 = pnand %p3141_p9, %p4548_p1 }
  0x14   : > { %p3328_p12 = pneg %p3572_p10 }
  0x16   : > { %p3329_p13 = pnand %p3328_p12, %p3327_p11 }
  0x18   : > { %p3330_p0 = pneg %p3329_p13 }
  0x1a   : > { %p3335_p5 = pnand %p3333_p3, %p3330_p0 }
  0x1c   : > { %3338 = shalt.err (!%p3335_p5)
}
  0x1d   : > { %s3339_s14 = scalar_lea.vmem %s176_s28, 24576  ;;  %p3347_p2 = scmp.lt.s32.totalorder %s176_s28, %s176_s28 }
  0x1e   : > { %p3340_p7 = scmp.ne.s32.totalorder %s176_s28, %s3339_s14  ;;  %p3348_p6 = scmp.lt.s32.totalorder %s3339_s14, %s3339_s14 }
  0x20   : > { %p3342_p9 = pnand %p3340_p7, %p3328_p12  ;;  %p3349_p4 = por %p3348_p6, %p3347_p2 }
  0x22   : > { %p3343_p1 = pneg %p3342_p9 }
  0x24   : > { %p3350_p8 = pnand %p3349_p4, %p3343_p1 }
  0x26   : > { %3353 = shalt.err (!%p3350_p8)
}
  0x27   : > { %s3486_s15 = smov 128   ;;  %s3487_s16 = smov 8  }
  0x28   : > { %3144 = dma.hbm_to_vmem [thread:$0]  (!%p3572_p10), %s4543_s1, 24576, %s176_s28, [#allocation6], %s3486_s15, %s3486_s15, %s3487_s16  }
  0x29   : > { %s3354_s7 = scalar_lea.hbm %s4545_s3, 24576 }
  0x2a   : > { %p3355_p11 = scmp.ne.s32.totalorder %s4545_s3, %s3354_s7  ;;  %p3361_p4 = scmp.lt.u32.totalorder %s3354_s7, %s4545_s3 }
  0x2c   : > { %p3357_p1 = pnand %p3355_p11, %p3328_p12 }
  0x2e   : > { %p3358_p2 = pneg %p3357_p1 }
  0x30   : > { %p3363_p6 = pnand %p3361_p4, %p3358_p2 }
  0x32   : > { %3366 = shalt.err (!%p3363_p6)
}
  0x33   : > { %s3367_s28 = scalar_lea.vmem %s3576_s6, 24576  ;;  %p3375_p3 = scmp.lt.s32.totalorder %s3576_s6, %s3576_s6 }
  0x34   : > { %p3368_p8 = scmp.ne.s32.totalorder %s3576_s6, %s3367_s28  ;;  %p3376_p5 = scmp.lt.s32.totalorder %s3367_s28, %s3367_s28 }
  0x36   : > { %p3370_p13 = pnand %p3368_p8, %p3328_p12  ;;  %p3377_p7 = por %p3376_p5, %p3375_p3 }
  0x38   : > { %p3371_p0 = pneg %p3370_p13 }
  0x3a   : > { %p3378_p9 = pnand %p3377_p7, %p3371_p0 }
  0x3c   : > { %3381 = shalt.err (!%p3378_p9)
}
  0x3d   : > { %s4551_s12 = smov 1536   ;;  %s3489_s13 = smov 96  }
  0x3e   : > { %3147 = dma.hbm_to_vmem [thread:$0]  (!%p3572_p10), %s4545_s3, 24576, %s3576_s6, [#allocation6], %s4551_s12, %s4551_s12, %s3489_s13  }
  0x3f   : > { %s3629_s16 = sadd.s32 1, %s3482_s21   ;;  %s29_s23 = sadd.s32 1, %s3478_s20 }
  0x40   : > { %s26_s17 = ssub.s32 %s3482_s21, %s3629_s16  ;;  %p36_p11 = scmp.ne.s32.totalorder %s3478_s20, %s3474_s19 }
  0x41   : > { %p27_p12 = scmp.eq.s32.totalorder %s26_s17, 0  ;;  %p37_p1 = scmp.eq.s32.totalorder %s3482_s21, 0 }
  0x42   : > { %p4569_p4 = scmp.eq.s32.totalorder %s3545_s22, 3  ;;  %p3158_p8 = scmp.lt.s32.totalorder %s3482_s21, 4 }
  0x43   : > { %s3638_s27 = scalar_select %p27_p12, %s3478_s20, %s29_s23  }
  0x44   : > { %p38_p2 = por %p37_p1, %p36_p11  ;;  %p3642_p6 = por %p4569_p4, %p36_p11 }
  0x45   : > { %s208_s30 = sand.u32 1, %s3478_s20   ;;  %s3125_s6 = smul.u32 3072, %s3482_s21 }
  0x46   : > { %s3124_s7 = smul.u32 192, %s208_s30  ;;  %p3649_p10 = pnand %p3158_p8, %p38_p2 }
  0x47   : > { %s3656_s11 = scalar_lea.hbm %s4542_s0, %s3125_s6  ;;  %s3660_s15 = scalar_lea.sflag [#allocation3], %s208_s30 }
  0x48   : > { %s212_s28 = scalar_lea.vmem [#allocation2], %s3124_s7  ;;  %s3382_s17 = scalar_lea.hbm %s3656_s11, 3072 }
  0x49   : > { %s219_s14 = sshll.u32 %s212_s28, 4  ;;  %p3383_p13 = scmp.ne.s32.totalorder %s3656_s11, %s3382_s17  ;;  %s3658_s14 = int_to_ptr.vmem [resolvable:$true] %s219_s14 }
  0x4a   : > { %p3384_p0 = pneg %p3649_p10  ;;  %s3387_s9 = scalar_lea.hbm %s4542_s0, 12288 }
  0x4b   : > { %p3388_p7 = scmp.lt.u32.totalorder %s3656_s11, %s4542_s0  ;;  %p3389_p9 = scmp.lt.u32.totalorder %s3387_s9, %s3382_s17 }
  0x4c   : > { %p3385_p3 = pnand %p3384_p0, %p3383_p13  ;;  %p3391_p11 = scmp.lt.u32.totalorder %s3382_s17, %s3656_s11 }
  0x4d   : > { %p3390_p12 = por %p3389_p9, %p3388_p7 }
  0x4e   : > { %p3386_p5 = pneg %p3385_p3 }
  0x4f   : > { %p3392_p1 = por %p3391_p11, %p3390_p12 }
  0x51   : > { %p3393_p2 = pnand %p3392_p1, %p3386_p5 }
  0x53   : > { %3396 = shalt.err (!%p3393_p2)
}
  0x54   : > { %s3397_s30 = scalar_lea.vmem %s3658_s14, 3072  ;;  %s3490_s7 = smov [#allocation2]  }
  0x55   : > { %p3398_p4 = scmp.ne.s32.totalorder %s3658_s14, %s3397_s30  ;;  %s3402_s28 = sshll.u32 %s3490_s7, 4  ;;  %s3403_s28 = int_to_ptr.vmem [resolvable:$false] %s3402_s28 }
  0x56   : > { %s3404_s12 = scalar_lea.vmem %s3403_s28, 6144  ;;  %p3405_p3 = scmp.lt.s32.totalorder %s3658_s14, %s3403_s28 }
  0x57   : > { %p3400_p8 = pnand %p3398_p4, %p3384_p0  ;;  %p3406_p7 = scmp.lt.s32.totalorder %s3404_s12, %s3397_s30 }
  0x59   : > { %p3401_p13 = pneg %p3400_p8  ;;  %p3407_p9 = por %p3406_p7, %p3405_p3 }
  0x5b   : > { %p3408_p12 = pnand %p3407_p9, %p3401_p13 }
  0x5d   : > { %3411 = shalt.err (!%p3408_p12)
}
  0x5e   : > { %s4572_s17 = smov 1536   ;;  %p4573_p0 = scmp.ne.s32.totalorder %s4567_s26, 0 }
  0x5f   : > { %3151 = dma.hbm_to_vmem [thread:$0]  (!%p3649_p10), %s3656_s11, 3072, %s3658_s14, %s3660_s15, %s4572_s17, %s4572_s17, %s3489_s13  }
  0x60   : > { %231 = sbr.rel (%p4573_p0) target bundleno = 859 (0x35b), region = 40 }
  0x67   : > { %s3694_s23 = sand.u32 1, %s3474_s19   ;;  %p4574_p5 = scmp.ne.s32.totalorder %s4565_s24, 0 }
  0x68   : > { %s3126_s6 = smul.u32 192, %s3694_s23  ;;  %s234_s9 = scalar_lea.sflag [#allocation3], %s3694_s23 }
  0x6a   : > { %s3698_s10 = scalar_lea.vmem [#allocation2], %s3126_s6 }
  0x6b   : > { %3457 = dma.done.wait (%p4574_p5), %s234_s9, 3072  }
  0x6c   : > { %3459 = vsyncadd (%p4574_p5), %s234_s9, 4294964224  ;;  %p4575_p10 = scmp.eq.s32.totalorder %s3545_s22, 0 }
  0x6e   : > { %3461 = dma.done.wait (%p4575_p10), [#allocation6], 49152   ;;  %p4576_p11 = pmov %p4575_p10 }
  0x6f   : > { %v312_v0 = vld [vmem:[#allocation5 + $0x80] sm:$0xff]  ;;  %v313_v1 = vld [vmem:[#allocation5 + $0x88] sm:$0xff]  ;;  %v314_v11 = vld [vmem:[#allocation5 + $0x90] sm:$0xff]  ;;  %vm2313_vm14 = vcmask 1040384   ;;  %s3127_s15 = smul.u32 24, %s3694_s23 }
  0x70   : > { %3463 = vsyncadd (%p4576_p11), [#allocation6], 4294918144  ;;  %v296_v2 = vld [vmem:[#allocation5] sm:$0xff]  ;;  %v2740_v3 = vpack.c.bf16 %v313_v1, %v312_v0  ;;  %v297_v4 = vld [vmem:[#allocation5 + $0x8] sm:$0xff]  ;;  %s3128_s30 = smul.u32 384, %s3545_s22  ;;  %s2396_s22 = scalar_lea.sflag [#allocation4], %s3694_s23 }
  0x71   : > { %v344_v5 = vld [vmem:[#allocation5 + $0x180] sm:$0xff]  ;;  %v345_v6 = vld [vmem:[#allocation5 + $0x188] sm:$0xff]  ;;  %v2742_v7 = vpack.c.bf16 %v297_v4, %v296_v2  ;;  %v315_v13 = vld [vmem:[#allocation5 + $0x98] sm:$0xff]  ;;  %s271_s7 = scalar_lea.vmem [#allocation8], %s3127_s15 }
  0x72   : > { %v2772_v8 = vpack.c.bf16 %v345_v6, %v344_v5  ;;  %v328_v9 = vld [vmem:[#allocation5 + $0x100] sm:$0xff]  ;;  %v329_v10 = vld [vmem:[#allocation5 + $0x108] sm:$0xff]  ;;  %2741 = vmatprep.subr.bf16.mxu0 %v2740_v3  ;;  %v298_v14 = vld [vmem:[#allocation5 + $0x10] sm:$0xff]  ;;  %v2744_v16 = vpack.c.bf16 %v315_v13, %v314_v11  ;;  %s2410_s28 = sshll.u32 %s271_s7, 4  ;;  %s4499_s6 = scalar_lea.hbm %s4547_s5, %s3128_s30  ;;  %s4501_s28 = int_to_ptr.vmem [resolvable:$true] %s2410_s28 }
  0x73   : > { %v2774_v12 = vpack.c.bf16 %v329_v10, %v328_v9  ;;  %v299_v15 = vld [vmem:[#allocation5 + $0x18] sm:$0xff]  ;;  %2743 = vmatpush3.bf16.msra.mxu0 %v2742_v7  ;;  %v346_v18 = vld [vmem:[#allocation5 + $0x190] sm:$0xff]  ;;  %v316_v23 = vld [vmem:[#allocation5 + $0xa0] sm:$0xff]  ;;  %s3412_s9 = scalar_lea.vmem %s4501_s28, 384 }
  0x74   : > { %2773 = vmatprep.subr.bf16.mxu1 %v2772_v8  ;;  %v2746_v17 = vpack.c.bf16 %v299_v15, %v298_v14  ;;  %v347_v19 = vld [vmem:[#allocation5 + $0x198] sm:$0xff]  ;;  %v330_v20 = vld [vmem:[#allocation5 + $0x110] sm:$0xff]  ;;  %v317_v24 = vld [vmem:[#allocation5 + $0xa8] sm:$0xff]  ;;  %2745 = vmatprep.subr.bf16.mxu0 %v2744_v16  ;;  %p3413_p1 = scmp.ne.s32.totalorder %s4501_s28, %s3412_s9 }
  0x75   : > { %2775 = vmatpush3.bf16.msra.mxu1 %v2774_v12  ;;  %v2776_v21 = vpack.c.bf16 %v347_v19, %v346_v18  ;;  %v331_v22 = vld [vmem:[#allocation5 + $0x118] sm:$0xff]  ;;  %v2748_v26 = vpack.c.bf16 %v317_v24, %v316_v23  ;;  %v300_v27 = vld [vmem:[#allocation5 + $0x20] sm:$0xff]  ;;  %v301_v28 = vld [vmem:[#allocation5 + $0x28] sm:$0xff] }
  0x76   : > { %v2778_v25 = vpack.c.bf16 %v331_v22, %v330_v20  ;;  %v348_v29 = vld [vmem:[#allocation5 + $0x1a0] sm:$0xff]  ;;  %v349_v30 = vld [vmem:[#allocation5 + $0x1a8] sm:$0xff]  ;;  %v2750_v33 = vpack.c.bf16 %v301_v28, %v300_v27  ;;  %v318_v35 = vld [vmem:[#allocation5 + $0xb0] sm:$0xff]  ;;  %p3414_p2 = pnand %p3413_p1, %p3642_p6 }
  0x77   : > { %2777 = vmatprep.subr.bf16.mxu1 %v2776_v21  ;;  %v332_v31 = vld [vmem:[#allocation5 + $0x120] sm:$0xff]  ;;  %v333_v32 = vld [vmem:[#allocation5 + $0x128] sm:$0xff]  ;;  %2747 = vmatpush3.bf16.msra.mxu0 %v2746_v17  ;;  %v2780_v34 = vpack.c.bf16 %v349_v30, %v348_v29  ;;  %v319_v36 = vld [vmem:[#allocation5 + $0xb8] sm:$0xff] }
  0x78   : > { %v302_v37 = vld [vmem:[#allocation5 + $0x30] sm:$0xff]  ;;  %2749 = vmatprep.subr.bf16.mxu0 %v2748_v26  ;;  %v2782_v38 = vpack.c.bf16 %v333_v32, %v332_v31  ;;  %v2752_v39 = vpack.c.bf16 %v319_v36, %v318_v35  ;;  %v303_v40 = vld [vmem:[#allocation5 + $0x38] sm:$0xff]  ;;  %v320_v46 = vld [vmem:[#allocation5 + $0xc0] sm:$0xff]  ;;  %p3415_p4 = pneg %p3414_p2 }
  0x79   : > { %2779 = vmatpush3.bf16.msra.mxu1 %v2778_v25  ;;  %v350_v41 = vld [vmem:[#allocation5 + $0x1b0] sm:$0xff]  ;;  %v351_v42 = vld [vmem:[#allocation5 + $0x1b8] sm:$0xff]  ;;  %v321_v47 = vld [vmem:[#allocation5 + $0xc8] sm:$0xff]  ;;  %v2754_v48 = vpack.c.bf16 %v303_v40, %v302_v37 }
  0x7a   : > { %2781 = vmatprep.subr.bf16.mxu1 %v2780_v34  ;;  %v2784_v43 = vpack.c.bf16 %v351_v42, %v350_v41  ;;  %v334_v44 = vld [vmem:[#allocation5 + $0x130] sm:$0xff]  ;;  %v335_v45 = vld [vmem:[#allocation5 + $0x138] sm:$0xff]  ;;  %v352_v49 = vld [vmem:[#allocation5 + $0x1c0] sm:$0xff]  ;;  %v2756_v52 = vpack.c.bf16 %v321_v47, %v320_v46 }
  0x7b   : > { %2751 = vmatpush3.bf16.msra.mxu0 %v2750_v33  ;;  %v353_v50 = vld [vmem:[#allocation5 + $0x1c8] sm:$0xff]  ;;  %v2786_v51 = vpack.c.bf16 %v335_v45, %v334_v44  ;;  %v304_v53 = vld [vmem:[#allocation5 + $0x40] sm:$0xff]  ;;  %v322_v58 = vld [vmem:[#allocation5 + $0xd0] sm:$0xff] }
  0x7c   : > { %2753 = vmatprep.subr.bf16.mxu0 %v2752_v39  ;;  %v305_v54 = vld [vmem:[#allocation5 + $0x48] sm:$0xff]  ;;  %v336_v55 = vld [vmem:[#allocation5 + $0x140] sm:$0xff]  ;;  %v2788_v56 = vpack.c.bf16 %v353_v50, %v352_v49  ;;  %v323_v59 = vld [vmem:[#allocation5 + $0xd8] sm:$0xff] }
  0x7d   : > { %2783 = vmatpush3.bf16.msra.mxu1 %v2782_v38  ;;  %v337_v57 = vld [vmem:[#allocation5 + $0x148] sm:$0xff]  ;;  %v354_v60 = vld [vmem:[#allocation5 + $0x1d0] sm:$0xff]  ;;  %v355_v61 = vld [vmem:[#allocation5 + $0x1d8] sm:$0xff]  ;;  %v2758_v62 = vpack.c.bf16 %v305_v54, %v304_v53  ;;  %v2760_v0 = vpack.c.bf16 %v323_v59, %v322_v58 }
  0x7e   : > { %2785 = vmatprep.subr.bf16.mxu1 %v2784_v43  ;;  %v2790_v63 = vpack.c.bf16 %v337_v57, %v336_v55  ;;  %v306_v1 = vld [vmem:[#allocation5 + $0x50] sm:$0xff]  ;;  %v307_v2 = vld [vmem:[#allocation5 + $0x58] sm:$0xff]  ;;  %v2792_v4 = vpack.c.bf16 %v355_v61, %v354_v60  ;;  %v324_v6 = vld [vmem:[#allocation5 + $0xe0] sm:$0xff] }
  0x7f   : > { %2755 = vmatpush3.bf16.msra.mxu0 %v2754_v48  ;;  %v338_v3 = vld [vmem:[#allocation5 + $0x150] sm:$0xff]  ;;  %v339_v5 = vld [vmem:[#allocation5 + $0x158] sm:$0xff]  ;;  %v325_v7 = vld [vmem:[#allocation5 + $0xe8] sm:$0xff]  ;;  %v2762_v10 = vpack.c.bf16 %v307_v2, %v306_v1 }
  0x80   : > { %2757 = vmatprep.subr.bf16.mxu0 %v2756_v52  ;;  %v356_v8 = vld [vmem:[#allocation5 + $0x1e0] sm:$0xff]  ;;  %v357_v9 = vld [vmem:[#allocation5 + $0x1e8] sm:$0xff]  ;;  %v2794_v13 = vpack.c.bf16 %v339_v5, %v338_v3  ;;  %v2764_v14 = vpack.c.bf16 %v325_v7, %v324_v6  ;;  %v326_v19 = vld [vmem:[#allocation5 + $0xf0] sm:$0xff] }
  0x81   : > { %2787 = vmatpush3.bf16.msra.mxu1 %v2786_v51  ;;  %v308_v11 = vld [vmem:[#allocation5 + $0x60] sm:$0xff]  ;;  %v309_v12 = vld [vmem:[#allocation5 + $0x68] sm:$0xff]  ;;  %v2796_v18 = vpack.c.bf16 %v357_v9, %v356_v8  ;;  %v327_v20 = vld [vmem:[#allocation5 + $0xf8] sm:$0xff] }
  0x82   : > { %2789 = vmatprep.subr.bf16.mxu1 %v2788_v56  ;;  %v340_v15 = vld [vmem:[#allocation5 + $0x160] sm:$0xff]  ;;  %v341_v16 = vld [vmem:[#allocation5 + $0x168] sm:$0xff]  ;;  %v275_v21 = vld [vmem:[%s3698_s10 + $0x18] sm:$0xff]  ;;  %v2766_v24 = vpack.c.bf16 %v309_v12, %v308_v11  ;;  %v2768_v26 = vpack.c.bf16 %v327_v20, %v326_v19 }
  0x83   : > { %2759 = vmatpush3.bf16.msra.mxu0 %v2758_v62  ;;  %v273_v17 = vld [vmem:[%s3698_s10 + $0x8] sm:$0xff]  ;;  %v358_v22 = vld [vmem:[#allocation5 + $0x1f0] sm:$0xff]  ;;  %v359_v23 = vld [vmem:[#allocation5 + $0x1f8] sm:$0xff]  ;;  %634 = vmatprep.mubr.f32.mxu1 %v275_v21  ;;  %v2798_v25 = vpack.c.bf16 %v341_v16, %v340_v15 }
  0x84   : > { %2761 = vmatprep.subr.bf16.mxu0 %v2760_v0  ;;  %559 = vmatprep.mubr.f32.mxu0 %v273_v17  ;;  %v310_v27 = vld [vmem:[#allocation5 + $0x70] sm:$0xff]  ;;  %v311_v28 = vld [vmem:[#allocation5 + $0x78] sm:$0xff]  ;;  %v2800_v30 = vpack.c.bf16 %v359_v23, %v358_v22  ;;  %v376_v32 = vld [vmem:[#allocation5 + $0x280] sm:$0xff] }
  0x85   : > { %2791 = vmatpush3.bf16.msra.mxu1 %v2790_v63  ;;  %v342_v29 = vld [vmem:[#allocation5 + $0x170] sm:$0xff]  ;;  %v343_v31 = vld [vmem:[#allocation5 + $0x178] sm:$0xff]  ;;  %v377_v33 = vld [vmem:[#allocation5 + $0x288] sm:$0xff]  ;;  %v2770_v36 = vpack.c.bf16 %v311_v28, %v310_v27 }
  0x86   : > { %2793 = vmatprep.subr.bf16.mxu1 %v2792_v4  ;;  %v408_v34 = vld [vmem:[#allocation5 + $0x380] sm:$0xff]  ;;  %v409_v35 = vld [vmem:[#allocation5 + $0x388] sm:$0xff]  ;;  %v2802_v37 = vpack.c.bf16 %v343_v31, %v342_v29  ;;  %v2804_v38 = vpack.c.bf16 %v377_v33, %v376_v32  ;;  %v378_v44 = vld [vmem:[#allocation5 + $0x290] sm:$0xff] }
  0x87   : > { %2763 = vmatpush3.bf16.msra.mxu0 %v2762_v10  ;;  %v360_v39 = vld [vmem:[#allocation5 + $0x200] sm:$0xff]  ;;  %v361_v40 = vld [vmem:[#allocation5 + $0x208] sm:$0xff]  ;;  %v2836_v42 = vpack.c.bf16 %v409_v35, %v408_v34  ;;  %v379_v45 = vld [vmem:[#allocation5 + $0x298] sm:$0xff] }
  0x88   : > { %2765 = vmatprep.subr.bf16.mxu0 %v2764_v14  ;;  %v392_v41 = vld [vmem:[#allocation5 + $0x300] sm:$0xff]  ;;  %v393_v43 = vld [vmem:[#allocation5 + $0x308] sm:$0xff]  ;;  %v410_v46 = vld [vmem:[#allocation5 + $0x390] sm:$0xff]  ;;  %v2806_v49 = vpack.c.bf16 %v361_v40, %v360_v39  ;;  %v2808_v52 = vpack.c.bf16 %v379_v45, %v378_v44 }
  0x89   : > { %2795 = vmatpush3.bf16.msra.mxu1 %v2794_v13  ;;  %v411_v47 = vld [vmem:[#allocation5 + $0x398] sm:$0xff]  ;;  %v272_v48 = vld [vmem:[%s3698_s10] sm:$0xff]  ;;  %v274_v50 = vld [vmem:[%s3698_s10 + $0x10] sm:$0xff]  ;;  %v2838_v51 = vpack.c.bf16 %v393_v43, %v392_v41 }
  0x8a   : > { %2797 = vmatprep.subr.bf16.mxu1 %v2796_v18  ;;  %v362_v53 = vld [vmem:[#allocation5 + $0x210] sm:$0xff]  ;;  %v363_v54 = vld [vmem:[#allocation5 + $0x218] sm:$0xff]  ;;  %v2840_v56 = vpack.c.bf16 %v411_v47, %v410_v46  ;;  %v380_v58 = vld [vmem:[#allocation5 + $0x2a0] sm:$0xff] }
  0x8b   : > { %2767 = vmatpush3.bf16.msra.mxu0 %v2766_v24  ;;  %v394_v55 = vld [vmem:[#allocation5 + $0x310] sm:$0xff]  ;;  %v395_v57 = vld [vmem:[#allocation5 + $0x318] sm:$0xff]  ;;  %v381_v59 = vld [vmem:[#allocation5 + $0x2a8] sm:$0xff]  ;;  %v2810_v62 = vpack.c.bf16 %v363_v54, %v362_v53 }
  0x8c   : > { %2769 = vmatprep.subr.bf16.mxu0 %v2768_v26  ;;  %v412_v60 = vld [vmem:[#allocation5 + $0x3a0] sm:$0xff]  ;;  %v413_v61 = vld [vmem:[#allocation5 + $0x3a8] sm:$0xff]  ;;  %v2842_v63 = vpack.c.bf16 %v395_v57, %v394_v55  ;;  %v2812_v0 = vpack.c.bf16 %v381_v59, %v380_v58  ;;  %v382_v6 = vld [vmem:[#allocation5 + $0x2b0] sm:$0xff] }
  0x8d   : > { %2799 = vmatpush3.bf16.msra.mxu1 %v2798_v25  ;;  %v364_v1 = vld [vmem:[#allocation5 + $0x220] sm:$0xff]  ;;  %v365_v2 = vld [vmem:[#allocation5 + $0x228] sm:$0xff]  ;;  %v2844_v4 = vpack.c.bf16 %v413_v61, %v412_v60  ;;  %v383_v7 = vld [vmem:[#allocation5 + $0x2b8] sm:$0xff] }
  0x8e   : > { %2801 = vmatprep.subr.bf16.mxu1 %v2800_v30  ;;  %v396_v3 = vld [vmem:[#allocation5 + $0x320] sm:$0xff]  ;;  %v397_v5 = vld [vmem:[#allocation5 + $0x328] sm:$0xff]  ;;  %v414_v8 = vld [vmem:[#allocation5 + $0x3b0] sm:$0xff]  ;;  %v2814_v10 = vpack.c.bf16 %v365_v2, %v364_v1  ;;  %v2816_v15 = vpack.c.bf16 %v383_v7, %v382_v6 }
  0x8f   : > { %2771 = vmatpush3.bf16.msra.mxu0 %v2770_v36  ;;  %v415_v9 = vld [vmem:[#allocation5 + $0x3b8] sm:$0xff]  ;;  %v366_v11 = vld [vmem:[#allocation5 + $0x230] sm:$0xff]  ;;  %v2846_v14 = vpack.c.bf16 %v397_v5, %v396_v3  ;;  %v285_v17 = vld [vmem:[%s3698_s10 + $0x68] sm:$0xff] }
  0x90   : > { %2805 = vmatprep.subr.bf16.mxu0 %v2804_v38  ;;  %v367_v12 = vld [vmem:[#allocation5 + $0x238] sm:$0xff]  ;;  %v398_v13 = vld [vmem:[#allocation5 + $0x330] sm:$0xff]  ;;  %v284_v18 = vld [vmem:[%s3698_s10 + $0x60] sm:$0xff]  ;;  %v2848_v19 = vpack.c.bf16 %v415_v9, %v414_v8 }
  0x91   : > { %2803 = vmatpush3.bf16.msra.mxu1 %v2802_v37  ;;  %v399_v16 = vld [vmem:[#allocation5 + $0x338] sm:$0xff]  ;;  %v384_v20 = vld [vmem:[#allocation5 + $0x2c0] sm:$0xff]  ;;  %v385_v21 = vld [vmem:[#allocation5 + $0x2c8] sm:$0xff]  ;;  %v2818_v25 = vpack.c.bf16 %v367_v12, %v366_v11 }
  0x92   : > { %2837 = vmatprep.subr.bf16.mxu1 %v2836_v42  ;;  %560 = vmatmul.mubr.f32.vlgmr.msra.gmra.mrb[0].mxu0 %v272_v48  ;;  %v287_v22 = vld [vmem:[%s3698_s10 + $0x78] sm:$0xff]  ;;  %v416_v23 = vld [vmem:[#allocation5 + $0x3c0] sm:$0xff]  ;;  %v417_v24 = vld [vmem:[#allocation5 + $0x3c8] sm:$0xff]  ;;  %v2850_v29 = vpack.c.bf16 %v399_v16, %v398_v13  ;;  %v2820_v30 = vpack.c.bf16 %v385_v21, %v384_v20 }
  0x93   : > { %2807 = vmatpush3.bf16.msra.mxu0 %v2806_v49  ;;  %564 = vmatprep.mubr.f32.mxu0 %v285_v17  ;;  %v368_v26 = vld [vmem:[#allocation5 + $0x240] sm:$0xff]  ;;  %v369_v27 = vld [vmem:[#allocation5 + $0x248] sm:$0xff]  ;;  %v286_v28 = vld [vmem:[%s3698_s10 + $0x70] sm:$0xff]  ;;  %v2852_v34 = vpack.c.bf16 %v417_v24, %v416_v23 }
  0x94   : > { %635 = vmatmul.mubr.f32.vlgmr.msra.gmra.mrb[0].mxu1 %v274_v50  ;;  %2809 = vmatprep.subr.bf16.mxu0 %v2808_v52  ;;  %v400_v31 = vld [vmem:[#allocation5 + $0x340] sm:$0xff]  ;;  %v401_v32 = vld [vmem:[#allocation5 + $0x348] sm:$0xff]  ;;  %v386_v35 = vld [vmem:[#allocation5 + $0x2d0] sm:$0xff]  ;;  %v2822_v40 = vpack.c.bf16 %v369_v27, %v368_v26 }
  0x95   : > { %2839 = vmatpush3.bf16.msra.mxu1 %v2838_v51  ;;  %639 = vmatprep.mubr.f32.mxu1 %v287_v22  ;;  %v277_v33 = vld [vmem:[%s3698_s10 + $0x28] sm:$0xff]  ;;  %v387_v36 = vld [vmem:[#allocation5 + $0x2d8] sm:$0xff]  ;;  %v418_v38 = vld [vmem:[#allocation5 + $0x3d0] sm:$0xff]  ;;  %v2854_v41 = vpack.c.bf16 %v401_v32, %v400_v31 }
  0x96   : > { %2841 = vmatprep.subr.bf16.mxu1 %v2840_v56  ;;  %565 = vmatmul.mubr.f32.gmra.mrb[2].mxu0 %v284_v18  ;;  %v279_v37 = vld [vmem:[%s3698_s10 + $0x38] sm:$0xff]  ;;  %v2824_v42 = vpack.c.bf16 %v387_v36, %v386_v35  ;;  %v370_v43 = vld [vmem:[#allocation5 + $0x250] sm:$0xff]  ;;  %v388_v48 = vld [vmem:[#allocation5 + $0x2e0] sm:$0xff] }
  0x97   : > { %2811 = vmatpush3.bf16.msra.mxu0 %v2810_v62  ;;  %v419_v39 = vld [vmem:[#allocation5 + $0x3d8] sm:$0xff]  ;;  %709 = vmatprep.mubr.f32.mxu0 %v277_v33  ;;  %v402_v45 = vld [vmem:[#allocation5 + $0x350] sm:$0xff]  ;;  %v389_v49 = vld [vmem:[#allocation5 + $0x2e8] sm:$0xff] }
  0x98   : > { %2813 = vmatprep.subr.bf16.mxu0 %v2812_v0  ;;  %640 = vmatmul.mubr.f32.gmra.mrb[2].mxu1 %v286_v28  ;;  %v371_v44 = vld [vmem:[#allocation5 + $0x258] sm:$0xff]  ;;  %v2856_v46 = vpack.c.bf16 %v419_v39, %v418_v38  ;;  %v420_v50 = vld [vmem:[#allocation5 + $0x3e0] sm:$0xff]  ;;  %v421_v51 = vld [vmem:[#allocation5 + $0x3e8] sm:$0xff]  ;;  %v2828_v54 = vpack.c.bf16 %v389_v49, %v388_v48 }
  0x99   : > { %2843 = vmatpush3.bf16.msra.mxu1 %v2842_v63  ;;  %784 = vmatprep.mubr.f32.mxu1 %v279_v37  ;;  %v403_v47 = vld [vmem:[#allocation5 + $0x358] sm:$0xff]  ;;  %v2826_v52 = vpack.c.bf16 %v371_v44, %v370_v43  ;;  %v372_v55 = vld [vmem:[#allocation5 + $0x260] sm:$0xff]  ;;  %v373_v56 = vld [vmem:[#allocation5 + $0x268] sm:$0xff]  ;;  %v2860_v58 = vpack.c.bf16 %v421_v51, %v420_v50 }
  0x9a   : > { %2845 = vmatprep.subr.bf16.mxu1 %v2844_v4  ;;  %v2858_v53 = vpack.c.bf16 %v403_v47, %v402_v45  ;;  %v404_v57 = vld [vmem:[#allocation5 + $0x360] sm:$0xff]  ;;  %v405_v59 = vld [vmem:[#allocation5 + $0x368] sm:$0xff]  ;;  %v390_v60 = vld [vmem:[#allocation5 + $0x2f0] sm:$0xff]  ;;  %v2830_v0 = vpack.c.bf16 %v373_v56, %v372_v55 }
  0x9b   : > { %2815 = vmatpush3.bf16.msra.mxu0 %v2814_v10  ;;  %v391_v61 = vld [vmem:[#allocation5 + $0x2f8] sm:$0xff]  ;;  %v422_v62 = vld [vmem:[#allocation5 + $0x3f0] sm:$0xff]  ;;  %v2862_v1 = vpack.c.bf16 %v405_v59, %v404_v57  ;;  %v440_v8 = vld [vmem:[#allocation5 + $0x480] sm:$0xff] }
  0x9c   : > { %2817 = vmatprep.subr.bf16.mxu0 %v2816_v15  ;;  %v423_v63 = vld [vmem:[#allocation5 + $0x3f8] sm:$0xff]  ;;  %v2832_v2 = vpack.c.bf16 %v391_v61, %v390_v60  ;;  %v374_v3 = vld [vmem:[#allocation5 + $0x270] sm:$0xff]  ;;  %v441_v9 = vld [vmem:[#allocation5 + $0x488] sm:$0xff] }
  0x9d   : > { %2847 = vmatpush3.bf16.msra.mxu1 %v2846_v14  ;;  %v375_v4 = vld [vmem:[#allocation5 + $0x278] sm:$0xff]  ;;  %v406_v5 = vld [vmem:[#allocation5 + $0x370] sm:$0xff]  ;;  %v2864_v6 = vpack.c.bf16 %v423_v63, %v422_v62  ;;  %v472_v10 = vld [vmem:[#allocation5 + $0x580] sm:$0xff]  ;;  %v2868_v14 = vpack.c.bf16 %v441_v9, %v440_v8 }
  0x9e   : > { %2849 = vmatprep.subr.bf16.mxu1 %v2848_v19  ;;  %v407_v7 = vld [vmem:[#allocation5 + $0x378] sm:$0xff]  ;;  %v473_v11 = vld [vmem:[#allocation5 + $0x588] sm:$0xff]  ;;  %v2834_v12 = vpack.c.bf16 %v375_v4, %v374_v3  ;;  %v424_v15 = vld [vmem:[#allocation5 + $0x400] sm:$0xff] }
  0x9f   : > { %2819 = vmatpush3.bf16.msra.mxu0 %v2818_v25  ;;  %v2866_v13 = vpack.c.bf16 %v407_v7, %v406_v5  ;;  %v425_v16 = vld [vmem:[#allocation5 + $0x408] sm:$0xff]  ;;  %v276_v17 = vld [vmem:[%s3698_s10 + $0x20] sm:$0xff]  ;;  %v2900_v18 = vpack.c.bf16 %v473_v11, %v472_v10  ;;  %v278_v21 = vld [vmem:[%s3698_s10 + $0x30] sm:$0xff] }
  0xa0   : > { %2821 = vmatprep.subr.bf16.mxu0 %v2820_v30  ;;  %v456_v19 = vld [vmem:[#allocation5 + $0x500] sm:$0xff]  ;;  %v457_v20 = vld [vmem:[#allocation5 + $0x508] sm:$0xff]  ;;  %v442_v22 = vld [vmem:[#allocation5 + $0x490] sm:$0xff]  ;;  %v2870_v24 = vpack.c.bf16 %v425_v16, %v424_v15 }
  0xa1   : > { %2851 = vmatpush3.bf16.msra.mxu1 %v2850_v29  ;;  %v443_v23 = vld [vmem:[#allocation5 + $0x498] sm:$0xff]  ;;  %v289_v25 = vld [vmem:[%s3698_s10 + $0x88] sm:$0xff]  ;;  %v474_v26 = vld [vmem:[#allocation5 + $0x590] sm:$0xff]  ;;  %v2902_v28 = vpack.c.bf16 %v457_v20, %v456_v19 }
  0xa2   : > { %2853 = vmatprep.subr.bf16.mxu1 %v2852_v34  ;;  %v475_v27 = vld [vmem:[#allocation5 + $0x598] sm:$0xff]  ;;  %v426_v29 = vld [vmem:[#allocation5 + $0x410] sm:$0xff]  ;;  %v2872_v32 = vpack.c.bf16 %v443_v23, %v442_v22  ;;  %v444_v34 = vld [vmem:[#allocation5 + $0x4a0] sm:$0xff] }
  0xa3   : > { %2823 = vmatpush3.bf16.msra.mxu0 %v2822_v40  ;;  %v427_v30 = vld [vmem:[#allocation5 + $0x418] sm:$0xff]  ;;  %v458_v31 = vld [vmem:[#allocation5 + $0x510] sm:$0xff]  ;;  %v445_v35 = vld [vmem:[#allocation5 + $0x4a8] sm:$0xff]  ;;  %v2904_v37 = vpack.c.bf16 %v475_v27, %v474_v26 }
  0xa4   : > { %2825 = vmatprep.subr.bf16.mxu0 %v2824_v42  ;;  %v459_v33 = vld [vmem:[#allocation5 + $0x518] sm:$0xff]  ;;  %v476_v38 = vld [vmem:[#allocation5 + $0x5a0] sm:$0xff]  ;;  %v477_v39 = vld [vmem:[#allocation5 + $0x5a8] sm:$0xff]  ;;  %v2876_v44 = vpack.c.bf16 %v445_v35, %v444_v34 }
  0xa5   : > { %2855 = vmatpush3.bf16.msra.mxu1 %v2854_v41  ;;  %v291_v36 = vld [vmem:[%s3698_s10 + $0x98] sm:$0xff]  ;;  %v288_v40 = vld [vmem:[%s3698_s10 + $0x80] sm:$0xff]  ;;  %v2874_v41 = vpack.c.bf16 %v427_v30, %v426_v29  ;;  %v290_v42 = vld [vmem:[%s3698_s10 + $0x90] sm:$0xff]  ;;  %v2906_v43 = vpack.c.bf16 %v459_v33, %v458_v31  ;;  %v2908_v48 = vpack.c.bf16 %v477_v39, %v476_v38 }
  0xa6   : > { %2857 = vmatprep.subr.bf16.mxu1 %v2856_v46  ;;  %v428_v45 = vld [vmem:[#allocation5 + $0x420] sm:$0xff]  ;;  %v429_v46 = vld [vmem:[#allocation5 + $0x428] sm:$0xff]  ;;  %v446_v50 = vld [vmem:[#allocation5 + $0x4b0] sm:$0xff] }
  0xa7   : > { %2827 = vmatpush3.bf16.msra.mxu0 %v2826_v52  ;;  %v460_v47 = vld [vmem:[#allocation5 + $0x520] sm:$0xff]  ;;  %v461_v49 = vld [vmem:[#allocation5 + $0x528] sm:$0xff]  ;;  %v447_v51 = vld [vmem:[#allocation5 + $0x4b8] sm:$0xff]  ;;  %v2878_v55 = vpack.c.bf16 %v429_v46, %v428_v45 }
  0xa8   : > { %2829 = vmatprep.subr.bf16.mxu0 %v2828_v54  ;;  %v478_v52 = vld [vmem:[#allocation5 + $0x5b0] sm:$0xff]  ;;  %v281_v54 = vld [vmem:[%s3698_s10 + $0x48] sm:$0xff]  ;;  %v283_v56 = vld [vmem:[%s3698_s10 + $0x58] sm:$0xff]  ;;  %v2910_v57 = vpack.c.bf16 %v461_v49, %v460_v47 }
  0xa9   : > { %2859 = vmatpush3.bf16.msra.mxu1 %v2858_v53  ;;  %v479_v53 = vld [vmem:[#allocation5 + $0x5b8] sm:$0xff]  ;;  %v430_v59 = vld [vmem:[#allocation5 + $0x430] sm:$0xff]  ;;  %v481_v3 = vld [vmem:[#allocation5 + $0x5c8] sm:$0xff] }
  0xaa   : > { %2861 = vmatprep.subr.bf16.mxu1 %v2860_v58  ;;  %v2880_v58 = vpack.c.bf16 %v447_v51, %v446_v50  ;;  %v431_v60 = vld [vmem:[#allocation5 + $0x438] sm:$0xff]  ;;  %v462_v61 = vld [vmem:[#allocation5 + $0x530] sm:$0xff]  ;;  %v2912_v62 = vpack.c.bf16 %v479_v53, %v478_v52  ;;  %v432_v7 = vld [vmem:[#allocation5 + $0x440] sm:$0xff] }
  0xab   : > { %2831 = vmatpush3.bf16.msra.mxu0 %v2830_v0  ;;  %v463_v63 = vld [vmem:[#allocation5 + $0x538] sm:$0xff]  ;;  %v448_v0 = vld [vmem:[#allocation5 + $0x4c0] sm:$0xff]  ;;  %v2882_v4 = vpack.c.bf16 %v431_v60, %v430_v59  ;;  %v433_v8 = vld [vmem:[#allocation5 + $0x448] sm:$0xff] }
  0xac   : > { %2833 = vmatprep.subr.bf16.mxu0 %v2832_v2  ;;  %v480_v2 = vld [vmem:[#allocation5 + $0x5c0] sm:$0xff]  ;;  %v2914_v5 = vpack.c.bf16 %v463_v63, %v462_v61  ;;  %v465_v11 = vld [vmem:[#allocation5 + $0x548] sm:$0xff]  ;;  %v483_v15 = vld [vmem:[#allocation5 + $0x5d8] sm:$0xff]  ;;  %v2886_v16 = vpack.c.bf16 %v433_v8, %v432_v7 }
  0xad   : > { %2863 = vmatpush3.bf16.msra.mxu1 %v2862_v1  ;;  %v449_v1 = vld [vmem:[#allocation5 + $0x4c8] sm:$0xff]  ;;  %v464_v9 = vld [vmem:[#allocation5 + $0x540] sm:$0xff]  ;;  %v2916_v10 = vpack.c.bf16 %v481_v3, %v480_v2  ;;  %v434_v19 = vld [vmem:[#allocation5 + $0x450] sm:$0xff] }
  0xae   : > { %2865 = vmatprep.subr.bf16.mxu1 %v2864_v6  ;;  %v2884_v6 = vpack.c.bf16 %v449_v1, %v448_v0  ;;  %v435_v20 = vld [vmem:[#allocation5 + $0x458] sm:$0xff]  ;;  %v484_v26 = vld [vmem:[#allocation5 + $0x5e0] sm:$0xff]  ;;  %v485_v27 = vld [vmem:[#allocation5 + $0x5e8] sm:$0xff] }
  0xaf   : > { %2835 = vmatpush3.bf16.msra.mxu0 %v2834_v12  ;;  %v450_v12 = vld [vmem:[#allocation5 + $0x4d0] sm:$0xff]  ;;  %v467_v23 = vld [vmem:[#allocation5 + $0x558] sm:$0xff]  ;;  %v436_v31 = vld [vmem:[#allocation5 + $0x460] sm:$0xff]  ;;  %v2924_v34 = vpack.c.bf16 %v485_v27, %v484_v26 }
  0xb0   : > { %2869 = vmatprep.subr.bf16.mxu0 %v2868_v14  ;;  %v482_v14 = vld [vmem:[#allocation5 + $0x5d0] sm:$0xff]  ;;  %v468_v33 = vld [vmem:[#allocation5 + $0x560] sm:$0xff]  ;;  %v469_v35 = vld [vmem:[#allocation5 + $0x568] sm:$0xff] }
  0xb1   : > { %2867 = vmatpush3.bf16.msra.mxu1 %v2866_v13  ;;  %v451_v13 = vld [vmem:[#allocation5 + $0x4d8] sm:$0xff]  ;;  %v2920_v22 = vpack.c.bf16 %v483_v15, %v482_v14  ;;  %v486_v38 = vld [vmem:[#allocation5 + $0x5f0] sm:$0xff]  ;;  %v280_v50 = vld [vmem:[%s3698_s10 + $0x40] sm:$0xff] }
  0xb2   : > { %2901 = vmatprep.subr.bf16.mxu1 %v2900_v18  ;;  %710 = vmatmul.mubr.f32.vlgmr.msra.gmra.mrb[4].mxu0 %v276_v17  ;;  %v2918_v17 = vpack.c.bf16 %v465_v11, %v464_v9  ;;  %v2888_v18 = vpack.c.bf16 %v451_v13, %v450_v12  ;;  %v487_v39 = vld [vmem:[#allocation5 + $0x5f8] sm:$0xff]  ;;  %v470_v46 = vld [vmem:[#allocation5 + $0x570] sm:$0xff]  ;;  %v293_v52 = vld [vmem:[%s3698_s10 + $0xa8] sm:$0xff] }
  0xb3   : > { %2871 = vmatpush3.bf16.msra.mxu0 %v2870_v24  ;;  %714 = vmatprep.mubr.f32.mxu0 %v289_v25  ;;  %v452_v24 = vld [vmem:[#allocation5 + $0x4e0] sm:$0xff]  ;;  %v453_v25 = vld [vmem:[#allocation5 + $0x4e8] sm:$0xff]  ;;  %v2928_v45 = vpack.c.bf16 %v487_v39, %v486_v38  ;;  %v471_v47 = vld [vmem:[#allocation5 + $0x578] sm:$0xff] }
  0xb4   : > { %785 = vmatmul.mubr.f32.vlgmr.msra.gmra.mrb[4].mxu1 %v278_v21  ;;  %2873 = vmatprep.subr.bf16.mxu0 %v2872_v32  ;;  %v466_v21 = vld [vmem:[#allocation5 + $0x550] sm:$0xff]  ;;  %v2892_v30 = vpack.c.bf16 %v453_v25, %v452_v24  ;;  %v437_v32 = vld [vmem:[#allocation5 + $0x468] sm:$0xff]  ;;  %v2930_v49 = vpack.c.bf16 %v471_v47, %v470_v46  ;;  %v295_v53 = vld [vmem:[%s3698_s10 + $0xb8] sm:$0xff] }
  0xb5   : > { %2903 = vmatpush3.bf16.msra.mxu1 %v2902_v28  ;;  %789 = vmatprep.mubr.f32.mxu1 %v291_v36  ;;  %v2890_v28 = vpack.c.bf16 %v435_v20, %v434_v19  ;;  %v2922_v29 = vpack.c.bf16 %v467_v23, %v466_v21  ;;  %v454_v36 = vld [vmem:[#allocation5 + $0x4f0] sm:$0xff]  ;;  %v962_v60 = vld [vmem:[#allocation7 + $0x78] sm:$0xff]  ;;  %v947_v61 = vld [vmem:[#allocation7] sm:$0xff] }
  0xb6   : > { %715 = vmatmul.mubr.f32.gmra.mrb[6].mxu0 %v288_v40  ;;  %2905 = vmatprep.subr.bf16.mxu1 %v2904_v37  ;;  %v455_v37 = vld [vmem:[#allocation5 + $0x4f8] sm:$0xff]  ;;  %v2894_v40 = vpack.c.bf16 %v437_v32, %v436_v31  ;;  %v282_v51 = vld [vmem:[%s3698_s10 + $0x50] sm:$0xff]  ;;  %v972_v3 = vld [vmem:[#allocation7 + $0xc8] sm:$0xff] }
  0xb7   : > { %2875 = vmatpush3.bf16.msra.mxu0 %v2874_v41  ;;  %859 = vmatprep.mubr.f32.mxu0 %v281_v54  ;;  %v2926_v41 = vpack.c.bf16 %v469_v35, %v468_v33  ;;  %v292_v54 = vld [vmem:[%s3698_s10 + $0xa0] sm:$0xff]  ;;  %v949_v1 = vld [vmem:[#allocation7 + $0x10] sm:$0xff]  ;;  %v986_v7 = vld [vmem:[#allocation7 + $0x138] sm:$0xff] }
  0xb8   : > { %790 = vmatmul.mubr.f32.gmra.mrb[6].mxu1 %v290_v42  ;;  %2877 = vmatprep.subr.bf16.mxu0 %v2876_v44  ;;  %v2896_v42 = vpack.c.bf16 %v455_v37, %v454_v36  ;;  %v439_v44 = vld [vmem:[#allocation5 + $0x478] sm:$0xff]  ;;  %v961_v2 = vld [vmem:[#allocation7 + $0x70] sm:$0xff]  ;;  %v983_v11 = vld [vmem:[#allocation7 + $0x120] sm:$0xff] }
  0xb9   : > { %2907 = vmatpush3.bf16.msra.mxu1 %v2906_v43  ;;  %934 = vmatprep.mubr.f32.mxu1 %v283_v56  ;;  %v438_v43 = vld [vmem:[#allocation5 + $0x470] sm:$0xff]  ;;  %v948_v56 = vld [vmem:[#allocation7 + $0x8] sm:$0xff]  ;;  %v998_v19 = vld [vmem:[#allocation7 + $0x198] sm:$0xff] }
  0xba   : > { %2909 = vmatprep.subr.bf16.mxu1 %v2908_v48  ;;  %v2898_v48 = vpack.c.bf16 %v439_v44, %v438_v43  ;;  %v973_v12 = vld [vmem:[#allocation7 + $0xd0] sm:$0xff]  ;;  %v996_v15 = vld [vmem:[#allocation7 + $0x188] sm:$0xff]  ;;  %v1010_v20 = vld [vmem:[#allocation7 + $0x1f8] sm:$0xff] }
  0xbb   : > { %2879 = vmatpush3.bf16.msra.mxu0 %v2878_v55  ;;  %v294_v55 = vld [vmem:[%s3698_s10 + $0xb0] sm:$0xff]  ;;  %v995_v21 = vld [vmem:[#allocation7 + $0x180] sm:$0xff]  ;;  %v1020_v27 = vld [vmem:[#allocation7 + $0x248] sm:$0xff] }
  0xbc   : > { %2881 = vmatprep.subr.bf16.mxu0 %v2880_v58  ;;  %v950_v58 = vld [vmem:[#allocation7 + $0x18] sm:$0xff]  ;;  %v985_v14 = vld [vmem:[#allocation7 + $0x130] sm:$0xff]  ;;  %v1007_v23 = vld [vmem:[#allocation7 + $0x1e0] sm:$0xff] }
  0xbd   : > { %2911 = vmatpush3.bf16.msra.mxu1 %v2910_v57  ;;  %v960_v57 = vld [vmem:[#allocation7 + $0x68] sm:$0xff]  ;;  %v2964_v63 = vpack.c.bf16 %v962_v60, %v950_v58  ;;  %v997_v24 = vld [vmem:[#allocation7 + $0x190] sm:$0xff]  ;;  %v2942_v26 = vpack.c.bf16 %v1007_v23, %v995_v21  ;;  %v1034_v32 = vld [vmem:[#allocation7 + $0x2b8] sm:$0xff]  ;;  %v3491_v23 = vmov 0.0  }
  0xbe   : > { %2913 = vmatprep.subr.bf16.mxu1 %v2912_v62  ;;  %v2932_v59 = vpack.c.bf16 %v960_v57, %v948_v56  ;;  %v959_v62 = vld [vmem:[#allocation7 + $0x60] sm:$0xff]  ;;  %v1009_v25 = vld [vmem:[#allocation7 + $0x1f0] sm:$0xff]  ;;  %v1058_v44 = vld [vmem:[#allocation7 + $0x378] sm:$0xff] }
  0xbf   : > { %2883 = vmatpush3.bf16.msra.mxu0 %v2882_v4  ;;  %v2934_v0 = vpack.c.bf16 %v959_v62, %v947_v61  ;;  %v2966_v4 = vpack.c.bf16 %v961_v2, %v949_v1  ;;  %v1019_v33 = vld [vmem:[#allocation7 + $0x240] sm:$0xff]  ;;  %v1021_v36 = vld [vmem:[#allocation7 + $0x250] sm:$0xff]  ;;  %v1082_v56 = vld [vmem:[#allocation7 + $0x438] sm:$0xff] }
  0xc0   : > { %2885 = vmatprep.subr.bf16.mxu0 %v2884_v6  ;;  %v974_v6 = vld [vmem:[#allocation7 + $0xd8] sm:$0xff]  ;;  %v1033_v37 = vld [vmem:[#allocation7 + $0x2b0] sm:$0xff]  ;;  %v1055_v46 = vld [vmem:[#allocation7 + $0x360] sm:$0xff] }
  0xc1   : > { %2915 = vmatpush3.bf16.msra.mxu1 %v2914_v5  ;;  %v984_v5 = vld [vmem:[#allocation7 + $0x128] sm:$0xff]  ;;  %v2968_v9 = vpack.c.bf16 %v986_v7, %v974_v6  ;;  %v2978_v39 = vpack.c.bf16 %v1033_v37, %v1021_v36  ;;  %v1067_v57 = vld [vmem:[#allocation7 + $0x3c0] sm:$0xff]  ;;  %v1069_v61 = vld [vmem:[#allocation7 + $0x3d0] sm:$0xff] }
  0xc2   : > { %2917 = vmatprep.subr.bf16.mxu1 %v2916_v10  ;;  %v2936_v8 = vpack.c.bf16 %v984_v5, %v972_v3  ;;  %v971_v10 = vld [vmem:[#allocation7 + $0xc0] sm:$0xff]  ;;  %v1081_v62 = vld [vmem:[#allocation7 + $0x430] sm:$0xff]  ;;  %v1104_v1 = vld [vmem:[#allocation7 + $0x4e8] sm:$0xff] }
  0xc3   : > { %2887 = vmatpush3.bf16.msra.mxu0 %v2886_v16  ;;  %v2938_v13 = vpack.c.bf16 %v983_v11, %v971_v10  ;;  %v1008_v16 = vld [vmem:[#allocation7 + $0x1e8] sm:$0xff]  ;;  %v1079_v58 = vld [vmem:[#allocation7 + $0x420] sm:$0xff]  ;;  %v1094_v2 = vld [vmem:[#allocation7 + $0x498] sm:$0xff] }
  0xc4   : > { %2889 = vmatprep.subr.bf16.mxu0 %v2888_v18  ;;  %v2940_v18 = vpack.c.bf16 %v1008_v16, %v996_v15  ;;  %v2954_v60 = vpack.c.bf16 %v1079_v58, %v1067_v57  ;;  %v1091_v5 = vld [vmem:[#allocation7 + $0x480] sm:$0xff]  ;;  %v1105_v10 = vld [vmem:[#allocation7 + $0x4f0] sm:$0xff]  ;;  %v1130_v16 = vld [vmem:[#allocation7 + $0x5b8] sm:$0xff] }
  0xc5   : > { %2919 = vmatpush3.bf16.msra.mxu1 %v2918_v17  ;;  %v2970_v17 = vpack.c.bf16 %v985_v14, %v973_v12  ;;  %v1103_v6 = vld [vmem:[#allocation7 + $0x4e0] sm:$0xff]  ;;  %v1116_v12 = vld [vmem:[#allocation7 + $0x548] sm:$0xff]  ;;  %v1118_v14 = vld [vmem:[#allocation7 + $0x558] sm:$0xff] }
  0xc6   : > { %2921 = vmatprep.subr.bf16.mxu1 %v2920_v22  ;;  %v2972_v22 = vpack.c.bf16 %v1010_v20, %v998_v19  ;;  %v2992_v19 = vpack.c.bf16 %v1130_v16, %v1118_v14  ;;  %v1117_v21 = vld [vmem:[#allocation7 + $0x550] sm:$0xff]  ;;  %v951_v16 = vld [vmem:[#allocation7 + $0x20] sm:$0xff] }
  0xc7   : > { %2891 = vmatpush3.bf16.msra.mxu0 %v2890_v28  ;;  %v1032_v28 = vld [vmem:[#allocation7 + $0x2a8] sm:$0xff] }
  0xc8   : > { %2893 = vmatprep.subr.bf16.mxu0 %v2892_v30  ;;  %v2974_v30 = vpack.c.bf16 %v1009_v25, %v997_v24  ;;  %v2944_v31 = vpack.c.bf16 %v1032_v28, %v1020_v27  ;;  %v952_v24 = vld [vmem:[#allocation7 + $0x28] sm:$0xff]  ;;  %v954_v27 = vld [vmem:[#allocation7 + $0x38] sm:$0xff] }
  0xc9   : > { %2923 = vmatpush3.bf16.msra.mxu1 %v2922_v29  ;;  %v1022_v29 = vld [vmem:[#allocation7 + $0x258] sm:$0xff] }
  0xca   : > { %2925 = vmatprep.subr.bf16.mxu1 %v2924_v34  ;;  %v1031_v34 = vld [vmem:[#allocation7 + $0x2a0] sm:$0xff]  ;;  %v2976_v35 = vpack.c.bf16 %v1034_v32, %v1022_v29  ;;  %v966_v28 = vld [vmem:[#allocation7 + $0x98] sm:$0xff] }
  0xcb   : > { %2895 = vmatpush3.bf16.msra.mxu0 %v2894_v40  ;;  %v2946_v38 = vpack.c.bf16 %v1031_v34, %v1019_v33  ;;  %v1044_v40 = vld [vmem:[#allocation7 + $0x308] sm:$0xff]  ;;  %v2508_v32 = vld [vmem:[%s4544_s2] ss:$0 sm:$0xff] }
  0xcc   : > { %2897 = vmatprep.subr.bf16.mxu0 %v2896_v42  ;;  %v1046_v42 = vld [vmem:[#allocation7 + $0x318] sm:$0xff] }
  0xcd   : > { %2927 = vmatpush3.bf16.msra.mxu1 %v2926_v41  ;;  %v1056_v41 = vld [vmem:[#allocation7 + $0x368] sm:$0xff]  ;;  %v2980_v47 = vpack.c.bf16 %v1058_v44, %v1046_v42 }
  0xce   : > { %2929 = vmatprep.subr.bf16.mxu1 %v2928_v45  ;;  %v2948_v43 = vpack.c.bf16 %v1056_v41, %v1044_v40  ;;  %v1043_v45 = vld [vmem:[#allocation7 + $0x300] sm:$0xff] }
  0xcf   : > { %2899 = vmatpush3.bf16.msra.mxu0 %v2898_v48  ;;  %v2950_v48 = vpack.c.bf16 %v1055_v46, %v1043_v45 }
  0xd0   : > { %2933 = vmatprep.subr.bf16.mxu0 %v2932_v59 }
  0xd1   : > { %2931 = vmatpush3.bf16.msra.mxu1 %v2930_v49  ;;  %v1045_v49 = vld [vmem:[#allocation7 + $0x310] sm:$0xff] }
  0xd2   : > { %860 = vmatmul.mubr.f32.vlgmr.msra.gmra.mrb[8].mxu0 %v280_v50  ;;  %2965 = vmatprep.subr.bf16.mxu1 %v2964_v63  ;;  %v1057_v50 = vld [vmem:[#allocation7 + $0x370] sm:$0xff]  ;;  %v2986_v63 = vpack.c.bf16 %v1081_v62, %v1069_v61 }
  0xd3   : > { %864 = vmatprep.mubr.f32.mxu0 %v293_v52  ;;  %2935 = vmatpush1.bf16.msra.mxu0 %v2934_v0  ;;  %v1068_v52 = vld [vmem:[#allocation7 + $0x3c8] sm:$0xff] }
  0xd4   : > { %935 = vmatmul.mubr.f32.vlgmr.msra.gmra.mrb[8].mxu1 %v282_v51  ;;  %2937 = vmatprep.subr.bf16.mxu0 %v2936_v8  ;;  %v2982_v51 = vpack.c.bf16 %v1057_v50, %v1045_v49  ;;  %v1092_v0 = vld [vmem:[#allocation7 + $0x488] sm:$0xff]  ;;  %v2958_v8 = vpack.c.bf16 %v1103_v6, %v1091_v5 }
  0xd5   : > { %939 = vmatprep.mubr.f32.mxu1 %v295_v53  ;;  %2967 = vmatpush1.bf16.msra.mxu1 %v2966_v4  ;;  %v1080_v53 = vld [vmem:[#allocation7 + $0x428] sm:$0xff]  ;;  %v2956_v3 = vpack.c.bf16 %v1104_v1, %v1092_v0  ;;  %v1106_v4 = vld [vmem:[#allocation7 + $0x4f8] sm:$0xff] }
  0xd6   : > { %865 = vmatmul.mubr.f32.gmra.mrb[10].mxu0 %v292_v54  ;;  %2969 = vmatprep.subr.bf16.mxu1 %v2968_v9  ;;  %v1070_v54 = vld [vmem:[#allocation7 + $0x3d8] sm:$0xff]  ;;  %v2988_v7 = vpack.c.bf16 %v1106_v4, %v1094_v2  ;;  %v1093_v9 = vld [vmem:[#allocation7 + $0x490] sm:$0xff] }
  0xd7   : > { %2939 = vmatpush1.bf16.msra.mxu0 %v2938_v13  ;;  %v2984_v59 = vpack.c.bf16 %v1082_v56, %v1070_v54  ;;  %v2990_v11 = vpack.c.bf16 %v1105_v10, %v1093_v9  ;;  %v1128_v13 = vld [vmem:[#allocation7 + $0x5a8] sm:$0xff]  ;;  %1267 = vmatprep.mubr.f32.mxu0 %v3491_v23 }
  0xd8   : > { %940 = vmatmul.mubr.f32.gmra.mrb[10].mxu1 %v294_v55  ;;  %2941 = vmatprep.subr.bf16.mxu0 %v2940_v18  ;;  %v2952_v55 = vpack.c.bf16 %v1080_v53, %v1068_v52  ;;  %v2960_v15 = vpack.c.bf16 %v1128_v13, %v1116_v12  ;;  %v1127_v18 = vld [vmem:[#allocation7 + $0x5a0] sm:$0xff] }
  0xd9   : > { %2971 = vmatpush1.bf16.msra.mxu1 %v2970_v17  ;;  %v1115_v17 = vld [vmem:[#allocation7 + $0x540] sm:$0xff]  ;;  %1344 = vmatprep.mubr.f32.mxu1 %v3491_v23 }
  0xda   : > { %2973 = vmatprep.subr.bf16.mxu1 %v2972_v22  ;;  %v2962_v20 = vpack.c.bf16 %v1127_v18, %v1115_v17  ;;  %v1129_v22 = vld [vmem:[#allocation7 + $0x5b0] sm:$0xff]  ;;  %v963_v17 = vld [vmem:[#allocation7 + $0x80] sm:$0xff] }
  0xdb   : > { %2943 = vmatpush1.bf16.msra.mxu0 %v2942_v26  ;;  %v2994_v25 = vpack.c.bf16 %v1129_v22, %v1117_v21  ;;  %v964_v26 = vld [vmem:[#allocation7 + $0x88] sm:$0xff]  ;;  %v953_v18 = vld [vmem:[#allocation7 + $0x30] sm:$0xff]  ;;  %v978_v22 = vld [vmem:[#allocation7 + $0xf8] sm:$0xff] }
  0xdc   : > { %2945 = vmatprep.subr.bf16.mxu0 %v2944_v31  ;;  %v2996_v29 = vpack.c.bf16 %v964_v26, %v952_v24  ;;  %v988_v21 = vld [vmem:[#allocation7 + $0x148] sm:$0xff]  ;;  %v990_v24 = vld [vmem:[#allocation7 + $0x158] sm:$0xff] }
  0xdd   : > { %2975 = vmatpush1.bf16.msra.mxu1 %v2974_v30  ;;  %v3028_v30 = vpack.c.bf16 %v966_v28, %v954_v27  ;;  %v975_v27 = vld [vmem:[#allocation7 + $0xe0] sm:$0xff] }
  0xde   : > { %2977 = vmatprep.subr.bf16.mxu1 %v2976_v35  ;;  %v987_v28 = vld [vmem:[#allocation7 + $0x140] sm:$0xff] }
  0xdf   : > { %2947 = vmatpush1.bf16.msra.mxu0 %v2946_v38 }
  0xe0   : > { %2949 = vmatprep.subr.bf16.mxu0 %v2948_v43 }
  0xe1   : > { %2979 = vmatpush1.bf16.msra.mxu1 %v2978_v39 }
  0xe2   : > { %2981 = vmatprep.subr.bf16.mxu1 %v2980_v47 }
  0xe3   : > { %2951 = vmatpush1.bf16.msra.mxu0 %v2950_v48 }
  0xe4   : > { %2953 = vmatprep.subr.bf16.mxu0 %v2952_v55 }
  0xe5   : > { %2983 = vmatpush1.bf16.msra.mxu1 %v2982_v51 }
  0xe6   : > { %2985 = vmatprep.subr.bf16.mxu1 %v2984_v59 }
  0xe7   : > { %2955 = vmatpush1.bf16.msra.mxu0 %v2954_v60 }
  0xe8   : > { %2957 = vmatprep.subr.bf16.mxu0 %v2956_v3 }
  0xe9   : > { %2987 = vmatpush1.bf16.msra.mxu1 %v2986_v63 }
  0xea   : > { %2989 = vmatprep.subr.bf16.mxu1 %v2988_v7 }
  0xeb   : > { %2959 = vmatpush1.bf16.msra.mxu0 %v2958_v8 }
  0xec   : > { %2961 = vmatprep.subr.bf16.mxu0 %v2960_v15 }
  0xed   : > { %2991 = vmatpush1.bf16.msra.mxu1 %v2990_v11 }
  0xee   : > { %2993 = vmatprep.subr.bf16.mxu1 %v2992_v19  ;;  %v965_v19 = vld [vmem:[#allocation7 + $0x90] sm:$0xff] }
  0xef   : > { %2963 = vmatpush1.bf16.msra.mxu0 %v2962_v20  ;;  %v976_v20 = vld [vmem:[#allocation7 + $0xe8] sm:$0xff]  ;;  %v3030_v26 = vpack.c.bf16 %v965_v19, %v953_v18  ;;  %v1085_v18 = vld [vmem:[#allocation7 + $0x450] sm:$0xff] }
  0xf0   : > { %2997 = vmatprep.subr.bf16.mxu0 %v2996_v29  ;;  %v977_v29 = vld [vmem:[#allocation7 + $0xf0] sm:$0xff]  ;;  %v1096_v19 = vld [vmem:[#allocation7 + $0x4a8] sm:$0xff] }
  0xf1   : > { %2995 = vmatpush1.bf16.msra.mxu1 %v2994_v25  ;;  %v2998_v25 = vpack.c.bf16 %v963_v17, %v951_v16  ;;  %v1073_v17 = vld [vmem:[#allocation7 + $0x3f0] sm:$0xff] }
  0xf2   : > { %3029 = vmatprep.subr.bf16.mxu1 %v3028_v30  ;;  %v989_v30 = vld [vmem:[#allocation7 + $0x150] sm:$0xff] }
 0x165   : > { %v2544_v31 = vpop.f32.mrb[0].mxu0 }
 0x166   : > { %v2545_v33 = vpop.f32.mrb[1].mxu0 }
 0x167   : > { %v2582_v34 = vpop.f32.mrb[0].mxu1  ;;  %v2546_v35 = vadd.f32 %v2545_v33, %v2544_v31  ;;  %v1000_v31 = vld [vmem:[#allocation7 + $0x1a8] sm:$0xff]  ;;  %v3000_v33 = vpack.c.bf16 %v988_v21, %v976_v20  ;;  %v1098_v21 = vld [vmem:[#allocation7 + $0x4b8] sm:$0xff] }
 0x168   : > { %v2583_v36 = vpop.f32.mrb[1].mxu1  ;;  %v1108_v20 = vld [vmem:[#allocation7 + $0x508] sm:$0xff] }
 0x169   : > { %v2584_v37 = vadd.f32 %v2583_v36, %v2582_v34  ;;  %v562_v38 = vadd.f32 %v2546_v35, %v2508_v32  ;;  %v2547_v40 = vpop.f32.mrb[2].mxu0  ;;  %v3032_v34 = vpack.c.bf16 %v990_v24, %v978_v22  ;;  %v1012_v35 = vld [vmem:[#allocation7 + $0x208] sm:$0xff]  ;;  %v1002_v36 = vld [vmem:[#allocation7 + $0x1b8] sm:$0xff] }
 0x16a   : > { %v2548_v41 = vpop.f32.mrb[3].mxu0  ;;  %v1110_v22 = vld [vmem:[#allocation7 + $0x518] sm:$0xff] }
 0x16b   : > { %v637_v39 = vadd.f32 %v2584_v37, %v562_v38  ;;  %v2549_v42 = vadd.f32 %v2548_v41, %v2547_v40  ;;  %v2585_v43 = vpop.f32.mrb[2].mxu1  ;;  %v1014_v37 = vld [vmem:[#allocation7 + $0x218] sm:$0xff]  ;;  %v3002_v38 = vpack.c.bf16 %v987_v28, %v975_v27  ;;  %v999_v40 = vld [vmem:[#allocation7 + $0x1a0] sm:$0xff]  ;;  %v3020_v28 = vpack.c.bf16 %v1108_v20, %v1096_v19  ;;  %v1040_v19 = vld [vmem:[#allocation7 + $0x2e8] sm:$0xff] }
 0x16c   : > { %v2586_v45 = vpop.f32.mrb[3].mxu1  ;;  %v1011_v41 = vld [vmem:[#allocation7 + $0x200] sm:$0xff]  ;;  %v1030_v20 = vld [vmem:[#allocation7 + $0x298] sm:$0xff] }
 0x16d   : > { %v567_v44 = vadd.f32 %v2549_v42, %v2508_v32  ;;  %v2587_v46 = vadd.f32 %v2586_v45, %v2585_v43  ;;  %v3004_v42 = vpack.c.bf16 %v1012_v35, %v1000_v31  ;;  %v3036_v43 = vpack.c.bf16 %v1014_v37, %v1002_v36  ;;  %v1013_v45 = vld [vmem:[#allocation7 + $0x210] sm:$0xff]  ;;  %v1107_v27 = vld [vmem:[#allocation7 + $0x500] sm:$0xff]  ;;  %v1122_v35 = vld [vmem:[#allocation7 + $0x578] sm:$0xff] }
 0x16e   : > { %v1109_v31 = vld [vmem:[#allocation7 + $0x510] sm:$0xff]  ;;  %v1134_v36 = vld [vmem:[#allocation7 + $0x5d8] sm:$0xff] }
 0x16f   : > { %v642_v47 = vadd.f32 %v2587_v46, %v567_v44  ;;  %v1001_v44 = vld [vmem:[#allocation7 + $0x1b0] sm:$0xff]  ;;  %v1024_v46 = vld [vmem:[#allocation7 + $0x268] sm:$0xff] }
 0x185   : > { %v2620_v48 = vpop.f32.mrb[4].mxu0 }
 0x186   : > { %v2621_v49 = vpop.f32.mrb[5].mxu0 }
 0x187   : > { %v2658_v50 = vpop.f32.mrb[4].mxu1  ;;  %v2622_v51 = vadd.f32 %v2621_v49, %v2620_v48  ;;  %v1036_v48 = vld [vmem:[#allocation7 + $0x2c8] sm:$0xff]  ;;  %v1026_v49 = vld [vmem:[#allocation7 + $0x278] sm:$0xff] }
 0x188   : > { %v2659_v52 = vpop.f32.mrb[5].mxu1 }
 0x189   : > { %v2660_v53 = vadd.f32 %v2659_v52, %v2658_v50  ;;  %v712_v54 = vadd.f32 %v2622_v51, %v637_v39  ;;  %v2623_v55 = vpop.f32.mrb[6].mxu0  ;;  %v3034_v39 = vpack.c.bf16 %v989_v30, %v977_v29  ;;  %v1038_v50 = vld [vmem:[#allocation7 + $0x2d8] sm:$0xff]  ;;  %v3006_v51 = vpack.c.bf16 %v1011_v41, %v999_v40  ;;  %v1097_v30 = vld [vmem:[#allocation7 + $0x4b0] sm:$0xff]  ;;  %v1131_v40 = vld [vmem:[#allocation7 + $0x5c0] sm:$0xff] }
 0x18a   : > { %v2624_v56 = vpop.f32.mrb[7].mxu0  ;;  %v3038_v52 = vpack.c.bf16 %v1013_v45, %v1001_v44  ;;  %v3052_v29 = vpack.c.bf16 %v1110_v22, %v1098_v21  ;;  %v1133_v44 = vld [vmem:[#allocation7 + $0x5d0] sm:$0xff]  ;;  %v956_v45 = vld [vmem:[#allocation7 + $0x48] sm:$0xff]  ;;  %v1042_v21 = vld [vmem:[#allocation7 + $0x2f8] sm:$0xff] }
 0x18b   : > { %v2661_v57 = vpop.f32.mrb[6].mxu1  ;;  %v787_v58 = vadd.f32 %v2660_v53, %v712_v54  ;;  %v2625_v59 = vadd.f32 %v2624_v56, %v2623_v55  ;;  %v1023_v53 = vld [vmem:[#allocation7 + $0x260] sm:$0xff]  ;;  %v3008_v55 = vpack.c.bf16 %v1036_v48, %v1024_v46  ;;  %v3040_v56 = vpack.c.bf16 %v1038_v50, %v1026_v49  ;;  %v968_v46 = vld [vmem:[#allocation7 + $0xa8] sm:$0xff]  ;;  %v958_v48 = vld [vmem:[#allocation7 + $0x58] sm:$0xff] }
 0x18c   : > { %v2662_v60 = vpop.f32.mrb[7].mxu1  ;;  %v1035_v54 = vld [vmem:[#allocation7 + $0x2c0] sm:$0xff]  ;;  %v970_v49 = vld [vmem:[#allocation7 + $0xb8] sm:$0xff] }
 0x18d   : > { %v2663_v61 = vadd.f32 %v2662_v60, %v2661_v57  ;;  %v717_v62 = vadd.f32 %v2625_v59, %v642_v47  ;;  %v1025_v57 = vld [vmem:[#allocation7 + $0x270] sm:$0xff]  ;;  %v1048_v59 = vld [vmem:[#allocation7 + $0x328] sm:$0xff] }
 0x18e   : > { %v1060_v60 = vld [vmem:[#allocation7 + $0x388] sm:$0xff] }
 0x18f   : > { %v792_v63 = vadd.f32 %v2663_v61, %v717_v62  ;;  %v1050_v61 = vld [vmem:[#allocation7 + $0x338] sm:$0xff] }
 0x190   : > { %v1062_v62 = vld [vmem:[#allocation7 + $0x398] sm:$0xff] }
 0x1a5   : > { %v2696_v0 = vpop.f32.mrb[8].mxu0 }
 0x1a6   : > { %v2697_v1 = vpop.f32.mrb[9].mxu0 }
 0x1a7   : > { %v2734_v2 = vpop.f32.mrb[8].mxu1  ;;  %v2698_v3 = vadd.f32 %v2697_v1, %v2696_v0  ;;  %v1047_v1 = vld [vmem:[#allocation7 + $0x320] sm:$0xff] }
 0x1a8   : > { %v2735_v4 = vpop.f32.mrb[9].mxu1 }
 0x1a9   : > { %v2736_v5 = vadd.f32 %v2735_v4, %v2734_v2  ;;  %v862_v6 = vadd.f32 %v2698_v3, %v787_v58  ;;  %v2699_v7 = vpop.f32.mrb[10].mxu0  ;;  %v1037_v58 = vld [vmem:[#allocation7 + $0x2d0] sm:$0xff]  ;;  %v1059_v2 = vld [vmem:[#allocation7 + $0x380] sm:$0xff]  ;;  %v3012_v3 = vpack.c.bf16 %v1060_v60, %v1048_v59  ;;  %v3044_v4 = vpack.c.bf16 %v1062_v62, %v1050_v61  ;;  %v992_v59 = vld [vmem:[#allocation7 + $0x168] sm:$0xff] }
 0x1aa   : > { %v2700_v8 = vpop.f32.mrb[11].mxu0  ;;  %v3042_v0 = vpack.c.bf16 %v1037_v58, %v1025_v57  ;;  %v969_v57 = vld [vmem:[#allocation7 + $0xb0] sm:$0xff]  ;;  %v980_v58 = vld [vmem:[#allocation7 + $0x108] sm:$0xff]  ;;  %v982_v60 = vld [vmem:[#allocation7 + $0x118] sm:$0xff] }
 0x1ab   : > { %v2737_v9 = vpop.f32.mrb[10].mxu1  ;;  %v937_v10 = vadd.f32 %v2736_v5, %v862_v6  ;;  %v2701_v11 = vadd.f32 %v2700_v8, %v2699_v7  ;;  %v1049_v5 = vld [vmem:[#allocation7 + $0x330] sm:$0xff]  ;;  %v1072_v7 = vld [vmem:[#allocation7 + $0x3e8] sm:$0xff]  ;;  %v994_v61 = vld [vmem:[#allocation7 + $0x178] sm:$0xff] }
 0x1ac   : > { %v2738_v12 = vpop.f32.mrb[11].mxu1  ;;  %v1061_v6 = vld [vmem:[#allocation7 + $0x390] sm:$0xff]  ;;  %v1084_v8 = vld [vmem:[#allocation7 + $0x448] sm:$0xff] }
 0x1ad   : > { %v2739_v13 = vadd.f32 %v2738_v12, %v2737_v9  ;;  %3202 = vtanh.f32 %v937_v10  ;;  %v867_v14 = vadd.f32 %v2701_v11, %v792_v63  ;;  %v3010_v63 = vpack.c.bf16 %v1035_v54, %v1023_v53  ;;  %v1074_v9 = vld [vmem:[#allocation7 + $0x3f8] sm:$0xff] }
 0x1ae   : > { %v1086_v10 = vld [vmem:[#allocation7 + $0x458] sm:$0xff]  ;;  %v3014_v11 = vpack.c.bf16 %v1059_v2, %v1047_v1  ;;  %v3046_v12 = vpack.c.bf16 %v1061_v6, %v1049_v5  ;;  %v3060_v53 = vpack.c.bf16 %v968_v46, %v956_v45  ;;  %v3092_v54 = vpack.c.bf16 %v970_v49, %v958_v48  ;;  %v991_v1 = vld [vmem:[#allocation7 + $0x160] sm:$0xff]  ;;  %v981_v2 = vld [vmem:[#allocation7 + $0x110] sm:$0xff] }
 0x1af   : > { %v942_v15 = vadd.f32 %v2739_v13, %v867_v14  ;;  %v1071_v13 = vld [vmem:[#allocation7 + $0x3e0] sm:$0xff]  ;;  %v3048_v16 = vpack.c.bf16 %v1086_v10, %v1074_v9  ;;  %v3064_v5 = vpack.c.bf16 %v992_v59, %v980_v58  ;;  %v3096_v6 = vpack.c.bf16 %v994_v61, %v982_v60  ;;  %v1018_v9 = vld [vmem:[#allocation7 + $0x238] sm:$0xff]  ;;  %v1088_v45 = vld [vmem:[#allocation7 + $0x468] sm:$0xff] }
 0x1b0   : > { %v1083_v14 = vld [vmem:[#allocation7 + $0x440] sm:$0xff]  ;;  %v1078_v46 = vld [vmem:[#allocation7 + $0x418] sm:$0xff]  ;;  %v1112_v58 = vld [vmem:[#allocation7 + $0x528] sm:$0xff] }
 0x1b1   : > { %3204 = vtanh.f32 %v942_v15  ;;  %v3016_v15 = vpack.c.bf16 %v1084_v8, %v1072_v7  ;;  %v3018_v24 = vpack.c.bf16 %v1083_v14, %v1071_v13  ;;  %v1016_v7 = vld [vmem:[#allocation7 + $0x228] sm:$0xff]  ;;  %v1006_v8 = vld [vmem:[#allocation7 + $0x1d8] sm:$0xff]  ;;  %v1015_v13 = vld [vmem:[#allocation7 + $0x220] sm:$0xff] }
 0x1b2   : > { %v1090_v48 = vld [vmem:[#allocation7 + $0x478] sm:$0xff] }
 0x1b3   : > { %v1102_v59 = vld [vmem:[#allocation7 + $0x4d8] sm:$0xff] }
 0x1b4   : > { %v1114_v60 = vld [vmem:[#allocation7 + $0x538] sm:$0xff] }
 0x1b7   : > { %v3737_v32 = vpop.eup %3202 }
 0x1b8   : > { %1268 = vmatmul.mubr.f32.vlgmr.msra.gmra.mrb[12].mxu0 %v3737_v32  ;;  %1345 = vmatmul.mubr.f32.vlgmr.msra.gmra.mrb[12].mxu1 %v3737_v32 }
 0x1b9   : > { %2999 = vmatpush1.bf16.msra.mxu0 %v2998_v25  ;;  %3031 = vmatpush1.bf16.msra.mxu1 %v3030_v26  ;;  %v3050_v25 = vpack.c.bf16 %v1085_v18, %v1073_v17  ;;  %v1095_v26 = vld [vmem:[#allocation7 + $0x4a0] sm:$0xff]  ;;  %v1017_v17 = vld [vmem:[#allocation7 + $0x230] sm:$0xff]  ;;  %v1028_v18 = vld [vmem:[#allocation7 + $0x288] sm:$0xff] }
 0x1ba   : > { %1273 = vmatprep.mubr.f32.mxu0 %v3491_v23  ;;  %1350 = vmatprep.mubr.f32.mxu1 %v3491_v23  ;;  %v3022_v37 = vpack.c.bf16 %v1107_v27, %v1095_v26  ;;  %v1039_v26 = vld [vmem:[#allocation7 + $0x2e0] sm:$0xff]  ;;  %v3072_v27 = vpack.c.bf16 %v1040_v19, %v1028_v18  ;;  %v1143_v19 = vlaneseq }
 0x1bb   : > { %v3743_v47 = vpop.eup %3204  ;;  %3001 = vmatprep.subr.bf16.mxu0 %v3000_v33  ;;  %3033 = vmatprep.subr.bf16.mxu1 %v3032_v34  ;;  %v1120_v33 = vld [vmem:[#allocation7 + $0x568] sm:$0xff] }
 0x1bc   : > { %1274 = vmatmul.mubr.f32.gmra.mrb[14].mxu0 %v3743_v47  ;;  %1351 = vmatmul.mubr.f32.gmra.mrb[14].mxu1 %v3743_v47  ;;  %v1132_v34 = vld [vmem:[#allocation7 + $0x5c8] sm:$0xff] }
 0x1bd   : > { %3003 = vmatpush1.bf16.msra.mxu0 %v3002_v38  ;;  %3035 = vmatpush1.bf16.msra.mxu1 %v3034_v39  ;;  %v3054_v38 = vpack.c.bf16 %v1109_v31, %v1097_v30  ;;  %v1119_v39 = vld [vmem:[#allocation7 + $0x560] sm:$0xff]  ;;  %v3024_v41 = vpack.c.bf16 %v1132_v34, %v1120_v33  ;;  %v1041_v30 = vld [vmem:[#allocation7 + $0x2f0] sm:$0xff]  ;;  %v1052_v31 = vld [vmem:[#allocation7 + $0x348] sm:$0xff] }
 0x1be   : > { %3005 = vmatprep.subr.bf16.mxu0 %v3004_v42  ;;  %3037 = vmatprep.subr.bf16.mxu1 %v3036_v43  ;;  %v3056_v42 = vpack.c.bf16 %v1134_v36, %v1122_v35  ;;  %v1121_v43 = vld [vmem:[#allocation7 + $0x570] sm:$0xff]  ;;  %v3026_v50 = vpack.c.bf16 %v1131_v40, %v1119_v39  ;;  %v1064_v33 = vld [vmem:[#allocation7 + $0x3a8] sm:$0xff]  ;;  %v1054_v34 = vld [vmem:[#allocation7 + $0x358] sm:$0xff] }
 0x1bf   : > { %1421 = vmatprep.mubr.f32.mxu0 %v3491_v23  ;;  %1498 = vmatprep.mubr.f32.mxu1 %v3491_v23  ;;  %v1066_v35 = vld [vmem:[#allocation7 + $0x3b8] sm:$0xff]  ;;  %v1063_v39 = vld [vmem:[#allocation7 + $0x3a0] sm:$0xff]  ;;  %v3076_v40 = vpack.c.bf16 %v1064_v33, %v1052_v31 }
 0x1c1   : > { %3007 = vmatpush1.bf16.msra.mxu0 %v3006_v51  ;;  %3039 = vmatpush1.bf16.msra.mxu1 %v3038_v52  ;;  %v3058_v51 = vpack.c.bf16 %v1133_v44, %v1121_v43  ;;  %v955_v52 = vld [vmem:[#allocation7 + $0x40] sm:$0xff]  ;;  %v1065_v43 = vld [vmem:[#allocation7 + $0x3b0] sm:$0xff]  ;;  %v1076_v44 = vld [vmem:[#allocation7 + $0x408] sm:$0xff] }
 0x1c2   : > { %3009 = vmatprep.subr.bf16.mxu0 %v3008_v55  ;;  %3041 = vmatprep.subr.bf16.mxu1 %v3040_v56  ;;  %v967_v55 = vld [vmem:[#allocation7 + $0xa0] sm:$0xff]  ;;  %v957_v56 = vld [vmem:[#allocation7 + $0x50] sm:$0xff] }
 0x1c3   : > { %v3062_v62 = vpack.c.bf16 %v967_v55, %v955_v52  ;;  %v1087_v52 = vld [vmem:[#allocation7 + $0x460] sm:$0xff]  ;;  %v1077_v55 = vld [vmem:[#allocation7 + $0x410] sm:$0xff] }
 0x1c5   : > { %3011 = vmatpush1.bf16.msra.mxu0 %v3010_v63  ;;  %3043 = vmatpush1.bf16.msra.mxu1 %v3042_v0  ;;  %v3094_v63 = vpack.c.bf16 %v969_v57, %v957_v56  ;;  %v979_v0 = vld [vmem:[#allocation7 + $0x100] sm:$0xff]  ;;  %v1089_v56 = vld [vmem:[#allocation7 + $0x470] sm:$0xff]  ;;  %v1100_v57 = vld [vmem:[#allocation7 + $0x4c8] sm:$0xff] }
 0x1c6   : > { %3013 = vmatprep.subr.bf16.mxu0 %v3012_v3  ;;  %3045 = vmatprep.subr.bf16.mxu1 %v3044_v4  ;;  %v993_v3 = vld [vmem:[#allocation7 + $0x170] sm:$0xff]  ;;  %v1004_v4 = vld [vmem:[#allocation7 + $0x1c8] sm:$0xff]  ;;  %v3066_v10 = vpack.c.bf16 %v991_v1, %v979_v0  ;;  %v1111_v0 = vld [vmem:[#allocation7 + $0x520] sm:$0xff]  ;;  %v3084_v1 = vpack.c.bf16 %v1112_v58, %v1100_v57 }
 0x1c7   : > { %v3068_v14 = vpack.c.bf16 %v1016_v7, %v1004_v4  ;;  %v1113_v4 = vld [vmem:[#allocation7 + $0x530] sm:$0xff]  ;;  %v1126_v7 = vld [vmem:[#allocation7 + $0x598] sm:$0xff] }
 0x1c9   : > { %3015 = vmatpush1.bf16.msra.mxu0 %v3014_v11  ;;  %3047 = vmatpush1.bf16.msra.mxu1 %v3046_v12  ;;  %v3098_v11 = vpack.c.bf16 %v993_v3, %v981_v2  ;;  %v1003_v12 = vld [vmem:[#allocation7 + $0x1c0] sm:$0xff]  ;;  %v3116_v2 = vpack.c.bf16 %v1114_v60, %v1102_v59  ;;  %v1101_v3 = vld [vmem:[#allocation7 + $0x4d0] sm:$0xff] }
 0x1ca   : > { %3017 = vmatprep.subr.bf16.mxu0 %v3016_v15  ;;  %3049 = vmatprep.subr.bf16.mxu1 %v3048_v16  ;;  %v3100_v15 = vpack.c.bf16 %v1018_v9, %v1006_v8  ;;  %v1005_v16 = vld [vmem:[#allocation7 + $0x1d0] sm:$0xff]  ;;  %v3070_v22 = vpack.c.bf16 %v1015_v13, %v1003_v12  ;;  %v1138_v8 = vld [vmem:[#allocation7 + $0x5f8] sm:$0xff] }
 0x1cb   : > { %v3120_v13 = vpack.c.bf16 %v1138_v8, %v1126_v7  ;;  %v3796_v8 = vld [vmem:[%s3698_s10 + $0x8] sm:$0xff] }
 0x1cd   : > { %3019 = vmatpush1.bf16.msra.mxu0 %v3018_v24  ;;  %3051 = vmatpush1.bf16.msra.mxu1 %v3050_v25  ;;  %v3102_v24 = vpack.c.bf16 %v1017_v17, %v1005_v16  ;;  %v1027_v25 = vld [vmem:[#allocation7 + $0x280] sm:$0xff]  ;;  %v1137_v16 = vld [vmem:[#allocation7 + $0x5f0] sm:$0xff] }
 0x1ce   : > { %3021 = vmatprep.subr.bf16.mxu0 %v3020_v28  ;;  %3053 = vmatprep.subr.bf16.mxu1 %v3052_v29  ;;  %v3104_v28 = vpack.c.bf16 %v1042_v21, %v1030_v20  ;;  %v1029_v29 = vld [vmem:[#allocation7 + $0x290] sm:$0xff]  ;;  %v3074_v36 = vpack.c.bf16 %v1039_v26, %v1027_v25  ;;  %v3763_v20 = vshrl.u32 %v1143_v19, 7 }
 0x1d0   : > { %4577 = vst [vmem:[#allocation12_spill] sm:$0xff] %v3763_v20  ;;  %v1145_v21 = vsub.s32 0, %v3763_v20 }
 0x1d1   : > { %3023 = vmatpush1.bf16.msra.mxu0 %v3022_v37  ;;  %3055 = vmatpush1.bf16.msra.mxu1 %v3054_v38  ;;  %v3106_v37 = vpack.c.bf16 %v1041_v30, %v1029_v29  ;;  %v1051_v38 = vld [vmem:[#allocation7 + $0x340] sm:$0xff] }
 0x1d2   : > { %3025 = vmatprep.subr.bf16.mxu0 %v3024_v41  ;;  %3057 = vmatprep.subr.bf16.mxu1 %v3056_v42  ;;  %v3108_v41 = vpack.c.bf16 %v1066_v35, %v1054_v34  ;;  %v1053_v42 = vld [vmem:[#allocation7 + $0x350] sm:$0xff]  ;;  %v3078_v49 = vpack.c.bf16 %v1063_v39, %v1051_v38 }
 0x1d5   : > { %3027 = vmatpush1.bf16.msra.mxu0 %v3026_v50  ;;  %3059 = vmatpush1.bf16.msra.mxu1 %v3058_v51  ;;  %v3110_v50 = vpack.c.bf16 %v1065_v43, %v1053_v42  ;;  %v1075_v51 = vld [vmem:[#allocation7 + $0x400] sm:$0xff] }
 0x1d6   : > { %3061 = vmatprep.subr.bf16.mxu0 %v3060_v53  ;;  %3093 = vmatprep.subr.bf16.mxu1 %v3092_v54  ;;  %v3080_v53 = vpack.c.bf16 %v1088_v45, %v1076_v44  ;;  %v3112_v54 = vpack.c.bf16 %v1090_v48, %v1078_v46  ;;  %v3082_v61 = vpack.c.bf16 %v1087_v52, %v1075_v51 }
 0x1d8   : > { %1422 = vmatmul.mubr.f32.vlgmr.msra.gmra.mrb[16].mxu0 %v3737_v32  ;;  %1499 = vmatmul.mubr.f32.vlgmr.msra.gmra.mrb[16].mxu1 %v3737_v32 }
 0x1d9   : > { %3063 = vmatpush1.bf16.msra.mxu0 %v3062_v62  ;;  %3095 = vmatpush1.bf16.msra.mxu1 %v3094_v63  ;;  %v3114_v62 = vpack.c.bf16 %v1089_v56, %v1077_v55  ;;  %v1099_v63 = vld [vmem:[#allocation7 + $0x4c0] sm:$0xff] }
 0x1da   : > { %1427 = vmatprep.mubr.f32.mxu0 %v3491_v23  ;;  %1504 = vmatprep.mubr.f32.mxu1 %v3491_v23  ;;  %v3086_v9 = vpack.c.bf16 %v1111_v0, %v1099_v63 }
 0x1db   : > { %3065 = vmatprep.subr.bf16.mxu0 %v3064_v5  ;;  %3097 = vmatprep.subr.bf16.mxu1 %v3096_v6  ;;  %v1124_v5 = vld [vmem:[#allocation7 + $0x588] sm:$0xff] }
 0x1dc   : > { %1428 = vmatmul.mubr.f32.gmra.mrb[18].mxu0 %v3743_v47  ;;  %1505 = vmatmul.mubr.f32.gmra.mrb[18].mxu1 %v3743_v47  ;;  %v1136_v6 = vld [vmem:[#allocation7 + $0x5e8] sm:$0xff] }
 0x1dd   : > { %3067 = vmatpush1.bf16.msra.mxu0 %v3066_v10  ;;  %3099 = vmatpush1.bf16.msra.mxu1 %v3098_v11  ;;  %v3118_v10 = vpack.c.bf16 %v1113_v4, %v1101_v3  ;;  %v1123_v11 = vld [vmem:[#allocation7 + $0x580] sm:$0xff]  ;;  %v3088_v12 = vpack.c.bf16 %v1136_v6, %v1124_v5 }
 0x1de   : > { %3069 = vmatprep.subr.bf16.mxu0 %v3068_v14  ;;  %3101 = vmatprep.subr.bf16.mxu1 %v3100_v15  ;;  %v1135_v14 = vld [vmem:[#allocation7 + $0x5e0] sm:$0xff]  ;;  %v1125_v15 = vld [vmem:[#allocation7 + $0x590] sm:$0xff] }
 0x1df   : > { %1575 = vmatprep.mubr.f32.mxu0 %v3491_v23  ;;  %1652 = vmatprep.mubr.f32.mxu1 %v3491_v23  ;;  %v3090_v17 = vpack.c.bf16 %v1135_v14, %v1123_v11  ;;  %v3122_v18 = vpack.c.bf16 %v1137_v16, %v1125_v15 }
 0x1e1   : > { %3071 = vmatpush1.bf16.msra.mxu0 %v3070_v22  ;;  %3103 = vmatpush1.bf16.msra.mxu1 %v3102_v24  ;;  %v1153_v22 = vsub.s32 2, %v3763_v20  ;;  %v3770_v24 = vld [vmem:[%s4546_s4] sm:$0xff] }
 0x1e2   : > { %3073 = vmatprep.subr.bf16.mxu0 %v3072_v27  ;;  %3105 = vmatprep.subr.bf16.mxu1 %v3104_v28 }
 0x1e3   : > { %v1154_v27 = vrot.slane %v3770_v24, %v1153_v22 }
 0x1e5   : > { %3075 = vmatpush1.bf16.msra.mxu0 %v3074_v36  ;;  %3107 = vmatpush1.bf16.msra.mxu1 %v3106_v37 }
 0x1e6   : > { %3077 = vmatprep.subr.bf16.mxu0 %v3076_v40  ;;  %3109 = vmatprep.subr.bf16.mxu1 %v3108_v41 }
 0x1e9   : > { %3079 = vmatpush1.bf16.msra.mxu0 %v3078_v49  ;;  %3111 = vmatpush1.bf16.msra.mxu1 %v3110_v50 }
 0x1ea   : > { %3081 = vmatprep.subr.bf16.mxu0 %v3080_v53  ;;  %3113 = vmatprep.subr.bf16.mxu1 %v3112_v54 }
 0x1ed   : > { %3083 = vmatpush1.bf16.msra.mxu0 %v3082_v61  ;;  %3115 = vmatpush1.bf16.msra.mxu1 %v3114_v62 }
 0x1ee   : > { %3085 = vmatprep.subr.bf16.mxu0 %v3084_v1  ;;  %3117 = vmatprep.subr.bf16.mxu1 %v3116_v2 }
 0x1f1   : > { %3087 = vmatpush1.bf16.msra.mxu0 %v3086_v9  ;;  %3119 = vmatpush1.bf16.msra.mxu1 %v3118_v10  ;;  %v3800_v9 = vmul.f32 %v3796_v8, %v3796_v8  ;;  %v3803_v10 = vld [vmem:[%s3698_s10] sm:$0xff] }
 0x1f2   : > { %3089 = vmatprep.subr.bf16.mxu0 %v3088_v12  ;;  %3121 = vmatprep.subr.bf16.mxu1 %v3120_v13  ;;  %v3807_v11 = vmul.f32 %v3803_v10, %v3803_v10 }
 0x1f5   : > { %3091 = vmatpush1.bf16.msra.mxu0 %v3090_v17  ;;  %3123 = vmatpush1.bf16.msra.mxu1 %v3122_v18 }
 0x1f8   : > { %1576 = vmatmul.mubr.f32.vlgmr.msra.gmra.mrb[20].mxu0 %v3737_v32  ;;  %1653 = vmatmul.mubr.f32.vlgmr.msra.gmra.mrb[20].mxu1 %v3737_v32  ;;  %v4553_v32 = vsub.s32 1, %v3763_v20 }
 0x1f9   : > { %1581 = vmatprep.mubr.f32.mxu0 %v3491_v23  ;;  %1658 = vmatprep.mubr.f32.mxu1 %v3491_v23  ;;  %v4552_v23 = vsub.s32 3, %v3763_v20 }
 0x1fa   : > { %v1150_v30 = vrot.slane %v3770_v24, %v4553_v32 }
 0x1fb   : > { %v1158_v31 = vrot.slane %v3770_v24, %v4552_v23 }
 0x1fc   : > { %1582 = vmatmul.mubr.f32.gmra.mrb[22].mxu0 %v3743_v47  ;;  %1659 = vmatmul.mubr.f32.gmra.mrb[22].mxu1 %v3743_v47  ;;  %v1146_v47 = vrot.slane %v3770_v24, %v1145_v21 }
 0x28b   : > { %v1269_v25 = vpop.f32.mrb[12].mxu0  ;;  %v1346_v26 = vpop.f32.mrb[12].mxu1 }
 0x28c   : > { %v1271_v28 = vpop.f32.mrb[13].mxu0  ;;  %v1348_v29 = vpop.f32.mrb[13].mxu1  ;;  %v1270_v35 = vadd.f32 %v1269_v25, %v1146_v47  ;;  %v1347_v36 = vadd.f32 %v1346_v26, %v1154_v27 }
 0x28d   : > { %v1272_v41 = vadd.f32 %v1271_v28, %v1150_v30  ;;  %v3786_v42 = vadd.f32 %v1348_v29, %v1158_v31 }
 0x28f   : > { %v1275_v33 = vpop.f32.mrb[14].mxu0  ;;  %v1352_v34 = vpop.f32.mrb[14].mxu1 }
 0x290   : > { %v1276_v37 = vadd.f32 %v1275_v33, %v1146_v47  ;;  %v1353_v38 = vadd.f32 %v1352_v34, %v1154_v27  ;;  %v1277_v39 = vpop.f32.mrb[15].mxu0  ;;  %v1354_v40 = vpop.f32.mrb[15].mxu1  ;;  %v3813_v47 = vld [vmem:[%s3698_s10 + $0x18] sm:$0xff]  ;;  %v3827_v34 = vld [vmem:[%s3698_s10 + $0x68] sm:$0xff] }
 0x291   : > { %v3788_v43 = vadd.f32 %v1277_v39, %v1150_v30  ;;  %v3790_v44 = vadd.f32 %v1354_v40, %v1158_v31  ;;  %v3817_v27 = vmul.f32 %v3813_v47, %v3813_v47  ;;  %v3820_v31 = vld [vmem:[%s3698_s10 + $0x10] sm:$0xff]  ;;  %v3841_v39 = vld [vmem:[%s3698_s10 + $0x78] sm:$0xff] }
 0x292   : > { %v1665_v45 = vmax.f32 %v1270_v35, %v1276_v37  ;;  %v1679_v46 = vmax.f32 %v1347_v36, %v1353_v38  ;;  %v3824_v33 = vmul.f32 %v3820_v31, %v3820_v31  ;;  %v3845_v40 = vmul.f32 %v3841_v39, %v3841_v39 }
 0x293   : > { %v1672_v48 = vmax.f32 %v1272_v41, %v3788_v43  ;;  %v1686_v49 = vmax.f32 %v3786_v42, %v3790_v44 }
 0x294   : > { %v1666_v50 = vrot.slane %v1665_v45, 4  ;;  %v1680_v51 = vrot.slane %v1679_v46, 4 }
 0x295   : > { %v1673_v52 = vrot.slane %v1672_v48, 4  ;;  %v1687_v53 = vrot.slane %v1686_v49, 4 }
 0x296   : > { %v1667_v54 = vmax.f32 %v1665_v45, %v1666_v50  ;;  %v1681_v55 = vmax.f32 %v1679_v46, %v1680_v51  ;;  %v3862_v46 = vld [vmem:[%s3698_s10 + $0x20] sm:$0xff]  ;;  %v3869_v50 = vld [vmem:[%s3698_s10 + $0x38] sm:$0xff] }
 0x297   : > { %v1674_v56 = vmax.f32 %v1672_v48, %v1673_v52  ;;  %v1688_v57 = vmax.f32 %v1686_v49, %v1687_v53  ;;  %v3866_v48 = vmul.f32 %v3862_v46, %v3862_v46  ;;  %4578 = vst [vmem:[#allocation13_spill] sm:$0xff] %v3869_v50  ;;  %v3873_v51 = vmul.f32 %v3869_v50, %v3869_v50 }
 0x298   : > { %v1668_v58 = vrot.slane %v1667_v54, 2  ;;  %v1682_v59 = vrot.slane %v1681_v55, 2  ;;  %v1161_v52 = vsub.s32 4, %v3763_v20  ;;  %v1169_v53 = vsub.s32 6, %v3763_v20 }
 0x299   : > { %v1675_v60 = vrot.slane %v1674_v56, 2  ;;  %v1689_v61 = vrot.slane %v1688_v57, 2  ;;  %4579 = vst [vmem:[#allocation14_spill] sm:$0xff] %v3873_v51 }
 0x29a   : > { %v1669_v62 = vmax.f32 %v1667_v54, %v1668_v58  ;;  %v1683_v63 = vmax.f32 %v1681_v55, %v1682_v59  ;;  %v1165_v55 = vsub.s32 5, %v3763_v20  ;;  %v3887_v59 = vld [vmem:[%s3698_s10 + $0x88] sm:$0xff] }
 0x29b   : > { %v1676_v0 = vmax.f32 %v1674_v56, %v1675_v60  ;;  %v1690_v1 = vmax.f32 %v1688_v57, %v1689_v61  ;;  %v1173_v56 = vsub.s32 7, %v3763_v20  ;;  %v3880_v57 = vld [vmem:[%s3698_s10 + $0x30] sm:$0xff]  ;;  %v3891_v60 = vmul.f32 %v3887_v59, %v3887_v59 }
 0x29c   : > { %v1670_v2 = vrot.slane %v1669_v62, 1  ;;  %v1684_v3 = vrot.slane %v1683_v63, 1  ;;  %v3884_v58 = vmul.f32 %v3880_v57, %v3880_v57 }
 0x29d   : > { %v1677_v4 = vrot.slane %v1676_v0, 1  ;;  %v1691_v5 = vrot.slane %v1690_v1, 1 }
 0x29e   : > { %v1671_v6 = vmax.f32 %v1669_v62, %v1670_v2  ;;  %v1685_v7 = vmax.f32 %v1683_v63, %v1684_v3  ;;  %v3894_v62 = vld [vmem:[%s3698_s10 + $0x80] sm:$0xff]  ;;  %v3908_v2 = vld [vmem:[%s3698_s10 + $0x90] sm:$0xff] }
 0x29f   : > { %v1678_v12 = vmax.f32 %v1676_v0, %v1677_v4  ;;  %v1692_v13 = vmax.f32 %v1690_v1, %v1691_v5  ;;  %v3898_v63 = vmul.f32 %v3894_v62, %v3894_v62  ;;  %v3901_v0 = vld [vmem:[%s3698_s10 + $0x98] sm:$0xff]  ;;  %v3912_v3 = vmul.f32 %v3908_v2, %v3908_v2  ;;  %v3915_v4 = vld [vmem:[%s3698_s10 + $0x48] sm:$0xff] }
 0x2a0   : > { %v1749_v14 = vsub.f32 %v1270_v35, %v1671_v6  ;;  %v1761_v15 = vsub.f32 %v1276_v37, %v1671_v6  ;;  %v1751_v16 = vsub.f32 %v1347_v36, %v1685_v7  ;;  %v1763_v17 = vsub.f32 %v1353_v38, %v1685_v7  ;;  %v3834_v36 = vld [vmem:[%s3698_s10 + $0x60] sm:$0xff]  ;;  %4580 = vst [vmem:[#allocation15_spill] sm:$0xff] %v3901_v0 }
 0x2a1   : > { %v1750_v18 = vsub.f32 %v1272_v41, %v1678_v12  ;;  %v1762_v19 = vsub.f32 %v3788_v43, %v1678_v12  ;;  %v1752_v25 = vsub.f32 %v3786_v42, %v1692_v13  ;;  %v1764_v26 = vsub.f32 %v3790_v44, %v1692_v13  ;;  %v3848_v41 = vld [vmem:[%s3698_s10 + $0x70] sm:$0xff]  ;;  %v3855_v44 = vld [vmem:[%s3698_s10 + $0x28] sm:$0xff]  ;;  %4582 = vst [vmem:[#allocation17_spill] sm:$0xff] %v3915_v4  ;;  %v3922_v6 = vld [vmem:[%s3698_s10 + $0x40] sm:$0xff] }
 0x2a2   : > { %v1773_v28 = vmul.f32 1.442695, %v1749_v14  ;;  %v1797_v29 = vmul.f32 1.442695, %v1761_v15  ;;  %v1777_v30 = vmul.f32 1.442695, %v1751_v16  ;;  %v3831_v35 = vmul.f32 %v3827_v34, %v3827_v34 }
 0x2a3   : > { %v3838_v37 = vmul.f32 %v3834_v36, %v3834_v36  ;;  %v1801_v38 = vmul.f32 1.442695, %v1763_v17  ;;  %v3852_v42 = vmul.f32 %v3848_v41, %v3848_v41  ;;  %v1775_v43 = vmul.f32 1.442695, %v1750_v18  ;;  %4584 = vst [vmem:[#allocation19_spill] sm:$0xff] %v3922_v6  ;;  %v3934_v15 = vld [vmem:[%s3698_s10 + $0x58] sm:$0xff] }
 0x2a4   : > { %3206 = vpow2.f32 %v1773_v28  ;;  %v3859_v45 = vmul.f32 %v3855_v44, %v3855_v44  ;;  %v1799_v49 = vmul.f32 1.442695, %v1762_v19  ;;  %v1779_v54 = vmul.f32 1.442695, %v1752_v25  ;;  %v1140_v14 = vld [vmem:[%s4546_s4 + $0x8] sm:$0xf] }
 0x2a5   : > { %3208 = vpow2.f32 %v1797_v29  ;;  %v1803_v61 = vmul.f32 1.442695, %v1764_v26  ;;  %v3905_v1 = vmul.f32 %v3901_v0, %v3901_v0  ;;  %v3919_v5 = vmul.f32 %v3915_v4, %v3915_v4  ;;  %4586 = vst [vmem:[#allocation21_spill] sm:$0xff] %v3934_v15  ;;  %v3945_v26 = vld [vmem:[%s3698_s10 + $0x50] sm:$0xff]  ;;  %v3952_v29 = vld [vmem:[%s3698_s10 + $0xa8] sm:$0xff] }
 0x2a6   : > { %3210 = vpow2.f32 %v1777_v30  ;;  %v3926_v7 = vmul.f32 %v3922_v6, %v3922_v6  ;;  %v1162_v12 = vrot.slane %v3770_v24, %v1161_v52  ;;  %v1170_v13 = vrot.slane %v3770_v24, %v1169_v53  ;;  %4588 = vst [vmem:[#allocation23_spill] sm:$0xff] %v3945_v26  ;;  %4590 = vst [vmem:[#allocation25_spill] sm:$0xff] %v3952_v29  ;;  %v3966_v52 = vld [vmem:[%s3698_s10 + $0xb8] sm:$0xff] }
 0x2a7   : > { %3212 = vpow2.f32 %v1801_v38  ;;  %4581 = vst [vmem:[#allocation16_spill] sm:$0xff] %v3905_v1  ;;  %4583 = vst [vmem:[#allocation18_spill] sm:$0xff] %v3919_v5  ;;  %v3938_v16 = vmul.f32 %v3934_v15, %v3934_v15  ;;  %v1166_v19 = vrot.slane %v3770_v24, %v1165_v55  ;;  %v3942_v25 = vrot.slane %v3770_v24, %v1173_v56  ;;  %v3959_v38 = vld [vmem:[%s3698_s10 + $0xa0] sm:$0xff] }
 0x2a8   : > { %3214 = vpow2.f32 %v1775_v43  ;;  %4585 = vst [vmem:[#allocation20_spill] sm:$0xff] %v3926_v7  ;;  %v3949_v28 = vmul.f32 %v3945_v26, %v3945_v26  ;;  %v3956_v30 = vmul.f32 %v3952_v29, %v3952_v29  ;;  %4592 = vst [vmem:[#allocation27_spill] sm:$0xff] %v3959_v38  ;;  %v3963_v43 = vmul.f32 %v3959_v38, %v3959_v38 }
 0x2a9   : > { %3216 = vpow2.f32 %v1799_v49  ;;  %4587 = vst [vmem:[#allocation22_spill] sm:$0xff] %v3938_v16  ;;  %4594 = vst [vmem:[#allocation29_spill] sm:$0xff] %v3966_v52  ;;  %v3970_v53 = vmul.f32 %v3966_v52, %v3966_v52  ;;  %v3981_v56 = vrot.slane %v1140_v14, %v1145_v21  ;;  %v4599_v15 = vsub.s32 3, %v3763_v20 }
 0x2aa   : > { %3218 = vpow2.f32 %v1779_v54  ;;  %4589 = vst [vmem:[#allocation24_spill] sm:$0xff] %v3949_v28  ;;  %4591 = vst [vmem:[#allocation26_spill] sm:$0xff] %v3956_v30  ;;  %v3973_v54 = vld [vmem:[%s3698_s10 + $0xb0] sm:$0xff]  ;;  %s3493_s10 = smov [#allocation8]  }
 0x2ab   : > { %v1423_v17 = vpop.f32.mrb[16].mxu0  ;;  %v1500_v18 = vpop.f32.mrb[16].mxu1  ;;  %4593 = vst [vmem:[#allocation28_spill] sm:$0xff] %v3963_v43  ;;  %3220 = vpow2.f32 %v1803_v61  ;;  %4595 = vst [vmem:[#allocation30_spill] sm:$0xff] %v3970_v53  ;;  %v3977_v55 = vmul.f32 %v3973_v54, %v3973_v54  ;;  %v3985_v61 = vrot.slane %v1140_v14, %v1153_v22  ;;  %v4598_v53 = vsub.s32 1, %v3763_v20  ;;  %s3416_s24 = sshll.u32 %s3493_s10, 4  ;;  %s3417_s24 = int_to_ptr.vmem [resolvable:$false] %s3416_s24 }
 0x2ac   : > { %v1425_v24 = vpop.f32.mrb[17].mxu0  ;;  %v1502_v49 = vpop.f32.mrb[17].mxu1  ;;  %4596 = vst [vmem:[#allocation31_spill] sm:$0xff] %v3973_v54  ;;  %v3987_v32 = vadd.f32 %v1423_v17, %v1162_v12  ;;  %v3989_v16 = vadd.f32 %v1500_v18, %v1170_v13  ;;  %v3997_v30 = vrot.slane %v1140_v14, %v4599_v15  ;;  %s3418_s26 = scalar_lea.vmem %s3417_s24, 768  ;;  %p3419_p8 = scmp.lt.s32.totalorder %s4501_s28, %s3417_s24 }
 0x2ad   : > { %4597 = vst [vmem:[#allocation32_spill] sm:$0xff] %v3977_v55  ;;  %v3993_v52 = vrot.slane %v1140_v14, %v4598_v53  ;;  %v4001_v22 = vadd.f32 %v1425_v24, %v1166_v19  ;;  %v4004_v17 = vadd.f32 %v1502_v49, %v3942_v25  ;;  %p3420_p13 = scmp.lt.s32.totalorder %s3418_s26, %s3412_s9 }
 0x2ae   : > { %v3207_v23 = vpop.eup %3206 }
 0x2af   : > { %v3209_v5 = vpop.eup %3208  ;;  %v1929_v21 = vmul.f32 %v3803_v10, %v3207_v23  ;;  %v2073_v29 = vmul.f32 %v3207_v23, %v3807_v11  ;;  %v1429_v18 = vpop.f32.mrb[18].mxu0  ;;  %p3421_p3 = por %p3420_p13, %p3419_p8 }
 0x2b0   : > { %v1506_v4 = vpop.f32.mrb[18].mxu1  ;;  %v3211_v55 = vpop.eup %3210  ;;  %v1821_v28 = vadd.f32 %v3209_v5, %v3207_v23  ;;  %v1941_v53 = vmul.f32 %v3834_v36, %v3209_v5  ;;  %v2085_v20 = vmul.f32 %v3209_v5, %v3838_v37  ;;  %v4008_v14 = vadd.f32 %v1429_v18, %v1162_v12 }
 0x2b1   : > { %v1431_v15 = vpop.f32.mrb[19].mxu0  ;;  %v4010_v54 = vpop.f32.mrb[19].mxu1  ;;  %v1931_v11 = vmul.f32 %v3820_v31, %v3211_v55  ;;  %v2075_v24 = vmul.f32 %v3211_v55, %v3824_v33  ;;  %v4014_v49 = vadd.f32 %v1506_v4, %v1170_v13  ;;  %p3422_p7 = pnand %p3421_p3, %p3415_p4 }
 0x2b2   : > { %v3213_v10 = vpop.eup %3212  ;;  %v4016_v26 = vadd.f32 %v1431_v15, %v1166_v19  ;;  %v1822_v23 = vrot.slane %v1821_v28, 4  ;;  %v4018_v38 = vadd.f32 %v1941_v53, %v1929_v21  ;;  %v2097_v36 = vadd.f32 %v2085_v20, %v2073_v29 }
 0x2b3   : > { %v3215_v43 = vpop.eup %3214  ;;  %v1835_v37 = vadd.f32 %v3213_v10, %v3211_v55  ;;  %v1943_v12 = vmul.f32 %v3848_v41, %v3213_v10  ;;  %v2087_v18 = vmul.f32 %v3213_v10, %v3852_v42 }
 0x2b4   : > { %v3217_v5 = vpop.eup %3216  ;;  %v1930_v7 = vmul.f32 %v3796_v8, %v3215_v43  ;;  %v2074_v31 = vmul.f32 %v3215_v43, %v3800_v9  ;;  %v1823_v33 = vadd.f32 %v1822_v23, %v1821_v28  ;;  %v1954_v4 = vrot.slane %v4018_v38, 4 }
 0x2b5   : > { %v2098_v13 = vrot.slane %v2097_v36, 4  ;;  %v1836_v19 = vrot.slane %v1835_v37, 4  ;;  %v3219_v15 = vpop.eup %3218  ;;  %v4025_v6 = vadd.f32 %v1943_v12, %v1931_v11  ;;  %v2111_v21 = vadd.f32 %v2087_v18, %v2075_v24 }
 0x2b6   : > { %v1828_v20 = vadd.f32 %v3217_v5, %v3215_v43  ;;  %v1942_v29 = vmul.f32 %v3827_v34, %v3217_v5  ;;  %v3221_v55 = vpop.eup %3220  ;;  %v1824_v41 = vrot.slane %v1823_v33, 2  ;;  %v2086_v8 = vmul.f32 %v3217_v5, %v3831_v35 }
 0x2b7   : > { %v2099_v53 = vadd.f32 %v2098_v13, %v2097_v36  ;;  %v1837_v42 = vadd.f32 %v1836_v19, %v1835_v37  ;;  %v2112_v28 = vrot.slane %v2111_v21, 4  ;;  %v1842_v18 = vadd.f32 %v3221_v55, %v3219_v15 }
 0x2b8   : > { %v1829_v10 = vrot.slane %v1828_v20, 4  ;;  %v1960_v23 = vadd.f32 %v1942_v29, %v1930_v7  ;;  %v1825_v1 = vadd.f32 %v1824_v41, %v1823_v33  ;;  %v2104_v11 = vadd.f32 %v2086_v8, %v2074_v31 }
 0x2b9   : > { %v2100_v51 = vrot.slane %v2099_v53, 2  ;;  %v1838_v0 = vrot.slane %v1837_v42, 2  ;;  %v2113_v12 = vadd.f32 %v2112_v28, %v2111_v21  ;;  %v1843_v5 = vrot.slane %v1842_v18, 4 }
 0x2ba   : > { %v1830_v24 = vadd.f32 %v1829_v10, %v1828_v20  ;;  %v1961_v43 = vrot.slane %v1960_v23, 4  ;;  %v1826_v34 = vrot.slane %v1825_v1, 1  ;;  %v2105_v37 = vrot.slane %v2104_v11, 4 }
 0x2bb   : > { %v4030_v50 = vadd.f32 %v2100_v51, %v2099_v53  ;;  %v1839_v36 = vadd.f32 %v1838_v0, %v1837_v42  ;;  %v2114_v13 = vrot.slane %v2113_v12, 2  ;;  %v1932_v19 = vmul.f32 %v3813_v47, %v3219_v15 }
 0x2bc   : > { %v1831_v35 = vrot.slane %v1830_v24, 2  ;;  %v1827_v9 = vadd.f32 %v1826_v34, %v1825_v1  ;;  %v2106_v33 = vadd.f32 %v2105_v37, %v2104_v11  ;;  %v1944_v29 = vmul.f32 %v3841_v39, %v3221_v55 }
 0x2bd   : > { %v1840_v7 = vrot.slane %v1839_v36, 1  ;;  %v4034_v31 = vadd.f32 %v2114_v13, %v2113_v12  ;;  %v1844_v20 = vadd.f32 %v1843_v5, %v1842_v18  ;;  %v2076_v41 = vmul.f32 %v3219_v15, %v3817_v27 }
 0x2be   : > { %v1832_v21 = vadd.f32 %v1831_v35, %v1830_v24  ;;  %3222 = vrcp.f32 %v1827_v9  ;;  %v2107_v0 = vrot.slane %v2106_v33, 2  ;;  %v1974_v53 = vadd.f32 %v1944_v29, %v1932_v19 }
 0x2bf   : > { %v1841_v51 = vadd.f32 %v1840_v7, %v1839_v36  ;;  %v1845_v8 = vrot.slane %v1844_v20, 2  ;;  %v2088_v28 = vmul.f32 %v3221_v55, %v3845_v40  ;;  %v1693_v47 = vmax.f32 %v3987_v32, %v4008_v14 }
 0x2c0   : > { %v1833_v42 = vrot.slane %v1832_v21, 1  ;;  %v4040_v1 = vadd.f32 %v2107_v0, %v2106_v33  ;;  %v1975_v39 = vrot.slane %v1974_v53, 4  ;;  %v1707_v10 = vmax.f32 %v3989_v16, %v4014_v49 }
 0x2c1   : > { %3224 = vrcp.f32 %v1841_v51  ;;  %v1846_v27 = vadd.f32 %v1845_v8, %v1844_v20  ;;  %v2118_v15 = vadd.f32 %v2088_v28, %v2076_v41  ;;  %v1694_v9 = vrot.slane %v1693_v47, 4 }
 0x2c2   : > { %v1834_v11 = vadd.f32 %v1833_v42, %v1832_v21  ;;  %v1708_v12 = vrot.slane %v1707_v10, 4  ;;  %v1700_v24 = vmax.f32 %v4001_v22, %v4016_v26  ;;  %v4048_v40 = vadd.f32 %v4010_v54, %v3942_v25 }
 0x2c3   : > { %v1955_v55 = vadd.f32 %v1954_v4, %v4018_v38  ;;  %v1847_v18 = vrot.slane %v1846_v27, 1  ;;  %v2119_v34 = vrot.slane %v2118_v15, 4  ;;  %v1695_v36 = vmax.f32 %v1693_v47, %v1694_v9 }
 0x2c4   : > { %3226 = vrcp.f32 %v1834_v11  ;;  %v1709_v37 = vmax.f32 %v1707_v10, %v1708_v12  ;;  %v1701_v13 = vrot.slane %v1700_v24, 4  ;;  %v1714_v35 = vmax.f32 %v4004_v17, %v4048_v40 }
 0x2c5   : > { %v1956_v5 = vrot.slane %v1955_v55, 2  ;;  %v1848_v19 = vadd.f32 %v1847_v18, %v1846_v27  ;;  %v2120_v7 = vadd.f32 %v2119_v34, %v2118_v15  ;;  %v1696_v33 = vrot.slane %v1695_v36, 2 }
 0x2c6   : > { %v1962_v29 = vadd.f32 %v1961_v43, %v1960_v23  ;;  %v1710_v21 = vrot.slane %v1709_v37, 2  ;;  %v1702_v20 = vmax.f32 %v1700_v24, %v1701_v13  ;;  %v1715_v25 = vrot.slane %v1714_v35, 4 }
 0x2c7   : > { %v1957_v54 = vadd.f32 %v1956_v5, %v1955_v55  ;;  %3228 = vrcp.f32 %v1848_v19  ;;  %v2121_v38 = vrot.slane %v2120_v7, 2  ;;  %v1697_v4 = vmax.f32 %v1695_v36, %v1696_v33 }
 0x2c8   : > { %v1963_v41 = vrot.slane %v1962_v29, 2  ;;  %v4053_v51 = vpop.eup %3222  ;;  %v1711_v0 = vmax.f32 %v1709_v37, %v1710_v21  ;;  %v1703_v42 = vrot.slane %v1702_v20, 2  ;;  %v1716_v8 = vmax.f32 %v1714_v35, %v1715_v25 }
 0x2c9   : > { %v1958_v28 = vrot.slane %v1957_v54, 1  ;;  %v4055_v47 = vadd.f32 %v2121_v38, %v2120_v7  ;;  %v1698_v10 = vrot.slane %v1697_v4, 1  ;;  %v4600_v23 = vrot.slane %v4025_v6, 4 }
 0x2ca   : > { %v1964_v11 = vadd.f32 %v1963_v41, %v1962_v29  ;;  %v1712_v15 = vrot.slane %v1711_v0, 1  ;;  %v1704_v9 = vmax.f32 %v1702_v20, %v1703_v42  ;;  %v1717_v12 = vrot.slane %v1716_v8, 2 }
 0x2cb   : > { %v4060_v43 = vadd.f32 %v4600_v23, %v4025_v6  ;;  %v4062_v27 = vpop.eup %3224  ;;  %v4064_v24 = vadd.f32 %v1958_v28, %v1957_v54  ;;  %v1699_v55 = vmax.f32 %v1697_v4, %v1698_v10  ;;  %v1577_v18 = vpop.f32.mrb[20].mxu0  ;;  %v4067_v13 = vadd.f32 %v1975_v39, %v1974_v53 }
 0x2cc   : > { %v1654_v34 = vpop.f32.mrb[20].mxu1  ;;  %v1965_v36 = vrot.slane %v1964_v11, 1  ;;  %v1713_v35 = vmax.f32 %v1711_v0, %v1712_v15  ;;  %v1705_v5 = vrot.slane %v1704_v9, 1  ;;  %v1718_v19 = vmax.f32 %v1716_v8, %v1717_v12  ;;  %v1579_v7 = vpop.f32.mrb[21].mxu0 }
 0x2cd   : > { %v1970_v37 = vrot.slane %v4060_v43, 2  ;;  %v4070_v6 = vadd.f32 %v1577_v18, %v3981_v56  ;;  %v1656_v33 = vpop.f32.mrb[21].mxu1  ;;  %v1753_v21 = vsub.f32 %v3987_v32, %v1699_v55  ;;  %v1765_v20 = vsub.f32 %v4008_v14, %v1699_v55 }
 0x2ce   : > { %v4072_v29 = vpop.eup %3226  ;;  %v4077_v25 = vadd.f32 %v1654_v34, %v3985_v61  ;;  %v4080_v53 = vadd.f32 %v1579_v7, %v3993_v52  ;;  %v1755_v39 = vsub.f32 %v3989_v16, %v1713_v35  ;;  %v1767_v54 = vsub.f32 %v4014_v49, %v1713_v35 }
 0x2cf   : > { %v1706_v38 = vmax.f32 %v1704_v9, %v1705_v5  ;;  %v1719_v4 = vrot.slane %v1718_v19, 1  ;;  %v1781_v41 = vmul.f32 1.442695, %v1753_v21  ;;  %v1805_v0 = vmul.f32 1.442695, %v1765_v20  ;;  %v1583_v32 = vpop.f32.mrb[22].mxu0 }
 0x2d0   : > { %v4085_v42 = vadd.f32 %v1656_v33, %v3997_v30  ;;  %v1660_v8 = vpop.f32.mrb[22].mxu1  ;;  %v1966_v14 = vadd.f32 %v1965_v36, %v1964_v11  ;;  %v1785_v28 = vmul.f32 1.442695, %v1755_v39  ;;  %v1809_v10 = vmul.f32 1.442695, %v1767_v54  ;;  %v1585_v12 = vpop.f32.mrb[23].mxu0 }
 0x2d1   : > { %v1754_v23 = vsub.f32 %v4001_v22, %v1706_v38  ;;  %v1766_v15 = vsub.f32 %v4016_v26, %v1706_v38  ;;  %v1662_v16 = vpop.f32.mrb[23].mxu1  ;;  %v4089_v55 = vpop.eup %3228  ;;  %3230 = vpow2.f32 %v1781_v41  ;;  %v1720_v49 = vmax.f32 %v1718_v19, %v1719_v4 }
 0x2d2   : > { %v4092_v9 = vadd.f32 %v1583_v32, %v3981_v56  ;;  %v4095_v18 = vadd.f32 %v1660_v8, %v3985_v61  ;;  %3232 = vpow2.f32 %v1805_v0  ;;  %v4098_v36 = vadd.f32 %v1585_v12, %v3993_v52 }
 0x2d3   : > { %v1783_v11 = vmul.f32 1.442695, %v1754_v23  ;;  %v1807_v34 = vmul.f32 1.442695, %v1766_v15  ;;  %3234 = vpow2.f32 %v1785_v28  ;;  %v1756_v26 = vsub.f32 %v4004_v17, %v1720_v49 }
 0x2d4   : > { %v1768_v22 = vsub.f32 %v4048_v40, %v1720_v49  ;;  %v1721_v35 = vmax.f32 %v4070_v6, %v4092_v9  ;;  %3236 = vpow2.f32 %v1809_v10  ;;  %v1735_v56 = vmax.f32 %v4077_v25, %v4095_v18 }
 0x2d5   : > { %v1728_v61 = vmax.f32 %v4080_v53, %v4098_v36  ;;  %v4109_v5 = vadd.f32 %v1662_v16, %v3997_v30  ;;  %3238 = vpow2.f32 %v1783_v11  ;;  %v1787_v52 = vmul.f32 1.442695, %v1756_v26 }
 0x2d6   : > { %v1811_v19 = vmul.f32 1.442695, %v1768_v22  ;;  %v1722_v7 = vrot.slane %v1721_v35, 4  ;;  %3240 = vpow2.f32 %v1807_v34  ;;  %v1736_v17 = vrot.slane %v1735_v56, 4 }
 0x2d7   : > { %v1729_v40 = vrot.slane %v1728_v61, 4  ;;  %v1742_v33 = vmax.f32 %v4085_v42, %v4109_v5  ;;  %3242 = vpow2.f32 %v1787_v52  ;;  %v1971_v20 = vadd.f32 %v1970_v37, %v4060_v43 }
 0x2d8   : > { %v1723_v21 = vmax.f32 %v1721_v35, %v1722_v7  ;;  %v1977_v39 = vrot.slane %v4067_v13, 2  ;;  %3244 = vpow2.f32 %v1811_v19  ;;  %v1737_v54 = vmax.f32 %v1735_v56, %v1736_v17 }
 0x2d9   : > { %v1730_v30 = vmax.f32 %v1728_v61, %v1729_v40  ;;  %v1743_v38 = vrot.slane %v1742_v33, 4  ;;  %v1972_v41 = vrot.slane %v1971_v20, 1  ;;  %v4120_v32 = vmul.f32 %v4053_v51, %v4064_v24 }
 0x2da   : > { %v1724_v4 = vrot.slane %v1723_v21, 2  ;;  %v4116_v0 = vadd.f32 %v1977_v39, %v4067_v13  ;;  %v1738_v8 = vrot.slane %v1737_v54, 2  ;;  %v4125_v43 = vmul.f32 %v4072_v29, %v1966_v14  ;;  %v4602_v13 = vld [vmem:[#allocation15_spill] sm:$0xff] }
 0x2db   : > { %v1731_v28 = vrot.slane %v1730_v30, 2  ;;  %v4122_v10 = vmax.f32 %v1742_v33, %v1743_v38  ;;  %v3231_v37 = vpop.eup %3230  ;;  %v4129_v15 = vadd.f32 %v1972_v41, %v1971_v20 }
 0x2dc   : > { %v4127_v23 = vmax.f32 %v1723_v21, %v1724_v4  ;;  %v3233_v16 = vpop.eup %3232  ;;  %v1933_v24 = vmul.f32 %v3862_v46, %v3231_v37  ;;  %v2077_v49 = vmul.f32 %v3231_v37, %v3866_v48  ;;  %v4135_v11 = vmax.f32 %v1737_v54, %v1738_v8 }
 0x2dd   : > { %v4137_v34 = vmax.f32 %v1730_v30, %v1731_v28  ;;  %v3235_v14 = vpop.eup %3234  ;;  %v1849_v26 = vadd.f32 %v3233_v16, %v3231_v37  ;;  %v1945_v22 = vmul.f32 %v3894_v62, %v3233_v16  ;;  %v2089_v35 = vmul.f32 %v3233_v16, %v3898_v63  ;;  %v4604_v30 = vld [vmem:[#allocation16_spill] sm:$0xff] }
 0x2de   : > { %v1726_v56 = vrot.slane %v4127_v23, 1  ;;  %v3237_v61 = vpop.eup %3236  ;;  %v1935_v52 = vmul.f32 %v3880_v57, %v3235_v14  ;;  %v2079_v19 = vmul.f32 %v3235_v14, %v3884_v58  ;;  %v1740_v46 = vrot.slane %v4135_v11, 1 }
 0x2df   : > { %v1733_v48 = vrot.slane %v4137_v34, 1  ;;  %v3239_v7 = vpop.eup %3238  ;;  %v1850_v17 = vrot.slane %v1849_v26, 4  ;;  %v4146_v40 = vadd.f32 %v1945_v22, %v1933_v24  ;;  %v2125_v33 = vadd.f32 %v2089_v35, %v2077_v49 }
 0x2e0   : > { %v1863_v21 = vadd.f32 %v3237_v61, %v3235_v14  ;;  %v3241_v62 = vpop.eup %3240  ;;  %v1947_v63 = vmul.f32 %v3908_v2, %v3237_v61  ;;  %v2091_v20 = vmul.f32 %v3237_v61, %v3912_v3  ;;  %v1934_v39 = vmul.f32 %v3855_v44, %v3239_v7 }
 0x2e1   : > { %v2078_v57 = vmul.f32 %v3239_v7, %v3859_v45  ;;  %v3243_v58 = vpop.eup %3242  ;;  %v1851_v54 = vadd.f32 %v1850_v17, %v1849_v26  ;;  %v2126_v38 = vrot.slane %v2125_v33, 4  ;;  %v1856_v37 = vadd.f32 %v3241_v62, %v3239_v7 }
 0x2e2   : > { %v1864_v4 = vrot.slane %v1863_v21, 4  ;;  %v3245_v41 = vpop.eup %3244  ;;  %v4153_v8 = vadd.f32 %v1947_v63, %v1935_v52  ;;  %v2139_v28 = vadd.f32 %v2091_v20, %v2079_v19  ;;  %v1946_v16 = vmul.f32 %v3887_v59, %v3241_v62 }
 0x2e3   : > { %v1852_v2 = vrot.slane %v1851_v54, 2  ;;  %v2127_v24 = vadd.f32 %v2126_v38, %v2125_v33  ;;  %v2090_v44 = vmul.f32 %v3241_v62, %v3891_v60  ;;  %v1857_v14 = vrot.slane %v1856_v37, 4 }
 0x2e4   : > { %v1865_v3 = vadd.f32 %v1864_v4, %v1863_v21  ;;  %v2140_v49 = vrot.slane %v2139_v28, 4  ;;  %v4158_v26 = vadd.f32 %v1946_v16, %v1934_v39  ;;  %v1870_v59 = vadd.f32 %v3245_v41, %v3243_v58  ;;  %v4601_v4 = vld [vmem:[#allocation13_spill] sm:$0xff] }
 0x2e5   : > { %v1853_v22 = vadd.f32 %v1852_v2, %v1851_v54  ;;  %v2128_v35 = vrot.slane %v2127_v24, 2  ;;  %v2132_v52 = vadd.f32 %v2090_v44, %v2078_v57  ;;  %v1858_v19 = vadd.f32 %v1857_v14, %v1856_v37 }
 0x2e6   : > { %v1866_v61 = vrot.slane %v1865_v3, 2  ;;  %v2141_v17 = vadd.f32 %v2140_v49, %v2139_v28  ;;  %v1989_v7 = vrot.slane %v4158_v26, 4  ;;  %v1871_v38 = vrot.slane %v1870_v59, 4  ;;  %v4603_v49 = vld [vmem:[#allocation14_spill] sm:$0xff] }
 0x2e7   : > { %v1854_v63 = vrot.slane %v1853_v22, 1  ;;  %v4161_v33 = vadd.f32 %v2128_v35, %v2127_v24  ;;  %v2133_v60 = vrot.slane %v2132_v52, 4  ;;  %v1859_v20 = vrot.slane %v1858_v19, 2 }
 0x2e8   : > { %v1867_v21 = vadd.f32 %v1866_v61, %v1865_v3  ;;  %v2142_v62 = vrot.slane %v2141_v17, 2  ;;  %v1936_v39 = vmul.f32 %v4601_v4, %v3243_v58  ;;  %v1948_v57 = vmul.f32 %v4602_v13, %v3245_v41 }
 0x2e9   : > { %v1855_v16 = vadd.f32 %v1854_v63, %v1853_v22  ;;  %v2134_v2 = vadd.f32 %v2133_v60, %v2132_v52  ;;  %v1860_v37 = vadd.f32 %v1859_v20, %v1858_v19  ;;  %v1872_v44 = vadd.f32 %v1871_v38, %v1870_v59 }
 0x2ea   : > { %v1868_v54 = vrot.slane %v1867_v21, 1  ;;  %v4165_v28 = vadd.f32 %v2142_v62, %v2141_v17  ;;  %v2080_v14 = vmul.f32 %v3243_v58, %v4603_v49  ;;  %v2002_v35 = vadd.f32 %v1948_v57, %v1936_v39 }
 0x2eb   : > { %3246 = vrcp.f32 %v1855_v16  ;;  %v2135_v3 = vrot.slane %v2134_v2, 2  ;;  %v1861_v61 = vrot.slane %v1860_v37, 1  ;;  %v1873_v45 = vrot.slane %v1872_v44, 2 }
 0x2ec   : > { %v1869_v24 = vadd.f32 %v1868_v54, %v1867_v21  ;;  %v2092_v12 = vmul.f32 %v3245_v41, %v4604_v30  ;;  %v1727_v22 = vmax.f32 %v4127_v23, %v1726_v56  ;;  %v2003_v52 = vrot.slane %v2002_v35, 4 }
 0x2ed   : > { %v4172_v13 = vadd.f32 %v2135_v3, %v2134_v2  ;;  %v1741_v58 = vmax.f32 %v4135_v11, %v1740_v46  ;;  %v1862_v17 = vadd.f32 %v1861_v61, %v1860_v37  ;;  %v1874_v19 = vadd.f32 %v1873_v45, %v1872_v44 }
 0x2ee   : > { %3248 = vrcp.f32 %v1869_v24  ;;  %v2146_v59 = vadd.f32 %v2092_v12, %v2080_v14  ;;  %v1757_v63 = vsub.f32 %v4070_v6, %v1727_v22  ;;  %v1769_v21 = vsub.f32 %v4092_v9, %v1727_v22 }
 0x2ef   : > { %v1759_v30 = vsub.f32 %v4077_v25, %v1741_v58  ;;  %v1771_v41 = vsub.f32 %v4095_v18, %v1741_v58  ;;  %v1734_v23 = vmax.f32 %v4137_v34, %v1733_v48  ;;  %3250 = vrcp.f32 %v1862_v17 }
 0x2f0   : > { %v1875_v56 = vrot.slane %v1874_v19, 1  ;;  %v2147_v60 = vrot.slane %v2146_v59, 4  ;;  %v1789_v62 = vmul.f32 1.442695, %v1757_v63  ;;  %v1813_v11 = vmul.f32 1.442695, %v1769_v21 }
 0x2f1   : > { %v1793_v46 = vmul.f32 1.442695, %v1759_v30  ;;  %v1817_v45 = vmul.f32 1.442695, %v1771_v41  ;;  %v1758_v12 = vsub.f32 %v4080_v53, %v1734_v23  ;;  %v1770_v25 = vsub.f32 %v4098_v36, %v1734_v23 }
 0x2f2   : > { %v1876_v6 = vadd.f32 %v1875_v56, %v1874_v19  ;;  %v2148_v20 = vadd.f32 %v2147_v60, %v2146_v59  ;;  %3252 = vpow2.f32 %v1789_v62  ;;  %v1745_v18 = vrot.slane %v4122_v10, 2 }
 0x2f3   : > { %3254 = vpow2.f32 %v1813_v11  ;;  %v1791_v9 = vmul.f32 1.442695, %v1758_v12  ;;  %v4605_v34 = vrot.slane %v4116_v0, 1  ;;  %v1815_v4 = vmul.f32 1.442695, %v1770_v25  ;;  %v4611_v25 = vld [vmem:[#allocation27_spill] sm:$0xff] }
 0x2f4   : > { %3256 = vrcp.f32 %v1876_v6  ;;  %v2149_v38 = vrot.slane %v2148_v20, 2  ;;  %v4606_v39 = vrot.slane %v4146_v40, 4  ;;  %v1746_v36 = vmax.f32 %v4122_v10, %v1745_v18  ;;  %v4612_v18 = vld [vmem:[#allocation28_spill] sm:$0xff] }
 0x2f5   : > { %v1980_v48 = vadd.f32 %v4605_v34, %v4116_v0  ;;  %v4193_v16 = vpop.eup %3246  ;;  %3258 = vpow2.f32 %v1793_v46  ;;  %v1990_v54 = vadd.f32 %v1989_v7, %v4158_v26  ;;  %v4607_v2 = vrot.slane %v4153_v8, 4  ;;  %v4609_v46 = vld [vmem:[#allocation19_spill] sm:$0xff] }
 0x2f6   : > { %v1983_v53 = vadd.f32 %v4606_v39, %v4146_v40  ;;  %v4200_v37 = vadd.f32 %v2149_v38, %v2148_v20  ;;  %3260 = vpow2.f32 %v1817_v45  ;;  %v2004_v44 = vadd.f32 %v2003_v52, %v2002_v35  ;;  %v4610_v45 = vld [vmem:[#allocation20_spill] sm:$0xff] }
 0x2f7   : > { %v1997_v57 = vadd.f32 %v4607_v2, %v4153_v8  ;;  %3262 = vpow2.f32 %v1791_v9  ;;  %v1747_v40 = vrot.slane %v1746_v36, 1  ;;  %v1991_v14 = vrot.slane %v1990_v54, 2 }
 0x2f8   : > { %v1984_v0 = vrot.slane %v1983_v53, 2  ;;  %v4202_v49 = vpop.eup %3248  ;;  %3264 = vpow2.f32 %v1815_v4  ;;  %v2005_v10 = vrot.slane %v2004_v44, 2  ;;  %v4206_v26 = vmul.f32 %v4062_v27, %v4129_v15 }
 0x2f9   : > { %v1998_v24 = vrot.slane %v1997_v57, 2  ;;  %v1748_v7 = vmax.f32 %v1746_v36, %v1747_v40  ;;  %v1992_v8 = vadd.f32 %v1991_v14, %v1990_v54  ;;  %v4209_v22 = vmul.f32 %v4089_v55, %v1980_v48  ;;  %v4211_v35 = vpop.eup %3250  ;;  %v4614_v14 = vld [vmem:[#allocation31_spill] sm:$0xff] }
 0x2fa   : > { %v1985_v3 = vadd.f32 %v1984_v0, %v1983_v53  ;;  %v2006_v58 = vadd.f32 %v2005_v10, %v2004_v44  ;;  %v4608_v17 = vrot.slane %v4030_v50, 1  ;;  %v2109_v59 = vrot.slane %v4040_v1, 1 }
 0x2fb   : > { %v1999_v61 = vadd.f32 %v1998_v24, %v1997_v57  ;;  %v1760_v15 = vsub.f32 %v4085_v42, %v1748_v7  ;;  %v1772_v63 = vsub.f32 %v4109_v5, %v1748_v7  ;;  %v1993_v21 = vrot.slane %v1992_v8, 1  ;;  %v4613_v57 = vld [vmem:[#allocation23_spill] sm:$0xff]  ;;  %v4616_v7 = vld [vmem:[#allocation32_spill] sm:$0xff] }
 0x2fc   : > { %v1986_v52 = vrot.slane %v1985_v3, 1  ;;  %v4216_v19 = vadd.f32 %v4608_v17, %v4030_v50  ;;  %v3253_v41 = vpop.eup %3252  ;;  %v2007_v56 = vrot.slane %v2006_v58, 1  ;;  %v4222_v60 = vadd.f32 %v2109_v59, %v4040_v1  ;;  %v4617_v59 = vld [vmem:[#allocation17_spill] sm:$0xff] }
 0x2fd   : > { %v2000_v30 = vrot.slane %v1999_v61, 1  ;;  %v2116_v62 = vrot.slane %v4034_v31, 1  ;;  %v3255_v11 = vpop.eup %3254  ;;  %v1937_v50 = vmul.f32 %v4609_v46, %v3253_v41  ;;  %v2081_v12 = vmul.f32 %v3253_v41, %v4610_v45 }
 0x2fe   : > { %v1987_v23 = vadd.f32 %v1986_v52, %v1985_v3  ;;  %v1795_v6 = vmul.f32 1.442695, %v1760_v15  ;;  %v1819_v20 = vmul.f32 1.442695, %v1772_v63  ;;  %v4227_v42 = vpop.eup %3256  ;;  %v1877_v5 = vadd.f32 %v3255_v11, %v3253_v41  ;;  %v4615_v3 = vld [vmem:[#allocation24_spill] sm:$0xff] }
 0x2ff   : > { %v1949_v9 = vmul.f32 %v4611_v25, %v3255_v11  ;;  %v2093_v34 = vmul.f32 %v3255_v11, %v4612_v18  ;;  %v4231_v48 = vadd.f32 %v1993_v21, %v1992_v8  ;;  %v3259_v1 = vpop.eup %3258  ;;  %v4233_v38 = vadd.f32 %v2000_v30, %v1999_v61  ;;  %v4618_v11 = vld [vmem:[#allocation25_spill] sm:$0xff] }
 0x300   : > { %3266 = vpow2.f32 %v1795_v6  ;;  %v4235_v4 = vadd.f32 %v2007_v56, %v2006_v58  ;;  %v4238_v39 = vmul.f32 %v4193_v16, %v1987_v23  ;;  %v3261_v53 = vpop.eup %3260  ;;  %v1878_v36 = vrot.slane %v1877_v5, 4 }
 0x301   : > { %v2009_v54 = vadd.f32 %v1949_v9, %v1937_v50  ;;  %v2153_v2 = vadd.f32 %v2093_v34, %v2081_v12  ;;  %v1939_v0 = vmul.f32 %v4613_v57, %v3259_v1  ;;  %v3263_v44 = vpop.eup %3262  ;;  %v1891_v40 = vadd.f32 %v3261_v53, %v3259_v1  ;;  %v4619_v50 = vld [vmem:[#allocation18_spill] sm:$0xff] }
 0x302   : > { %v1951_v24 = vmul.f32 %v4614_v14, %v3261_v53  ;;  %v2083_v10 = vmul.f32 %v3259_v1, %v4615_v3  ;;  %v2095_v8 = vmul.f32 %v3261_v53, %v4616_v7  ;;  %v3265_v61 = vpop.eup %3264  ;;  %v1879_v52 = vadd.f32 %v1878_v36, %v1877_v5  ;;  %v4620_v1 = vld [vmem:[#allocation26_spill] sm:$0xff] }
 0x303   : > { %v2010_v58 = vrot.slane %v2009_v54, 4  ;;  %v2154_v17 = vrot.slane %v2153_v2, 4  ;;  %v1938_v15 = vmul.f32 %v4617_v59, %v3263_v44  ;;  %v1892_v63 = vrot.slane %v1891_v40, 4  ;;  %v4621_v59 = vld [vmem:[#allocation21_spill] sm:$0xff] }
 0x304   : > { %v2023_v21 = vadd.f32 %v1951_v24, %v1939_v0  ;;  %v2167_v30 = vadd.f32 %v2095_v8, %v2083_v10  ;;  %v1884_v41 = vadd.f32 %v3265_v61, %v3263_v44  ;;  %v1880_v23 = vrot.slane %v1879_v52, 2 }
 0x305   : > { %v2155_v56 = vadd.f32 %v2154_v17, %v2153_v2  ;;  %v1950_v46 = vmul.f32 %v4618_v11, %v3265_v61  ;;  %v2082_v45 = vmul.f32 %v3263_v44, %v4619_v50  ;;  %v1893_v12 = vadd.f32 %v1892_v63, %v1891_v40  ;;  %v4622_v63 = vld [vmem:[#allocation22_spill] sm:$0xff] }
 0x306   : > { %v2024_v6 = vrot.slane %v2023_v21, 4  ;;  %v2168_v25 = vrot.slane %v2167_v30, 4  ;;  %v1885_v9 = vrot.slane %v1884_v41, 4  ;;  %v1881_v18 = vadd.f32 %v1880_v23, %v1879_v52 }
 0x307   : > { %v2156_v5 = vrot.slane %v2155_v56, 2  ;;  %v2016_v34 = vadd.f32 %v1950_v46, %v1938_v15  ;;  %v2094_v53 = vmul.f32 %v3265_v61, %v4620_v1  ;;  %v1894_v36 = vrot.slane %v1893_v12, 2 }
 0x308   : > { %v2169_v57 = vadd.f32 %v2168_v25, %v2167_v30  ;;  %v1886_v0 = vadd.f32 %v1885_v9, %v1884_v41  ;;  %3268 = vpow2.f32 %v1819_v20  ;;  %v1882_v14 = vrot.slane %v1881_v18, 1 }
 0x309   : > { %v4248_v24 = vadd.f32 %v2156_v5, %v2155_v56  ;;  %v2017_v2 = vrot.slane %v2016_v34, 4  ;;  %v2160_v3 = vadd.f32 %v2094_v53, %v2082_v45  ;;  %v1895_v44 = vadd.f32 %v1894_v36, %v1893_v12 }
 0x30a   : > { %v3267_v10 = vpop.eup %3266  ;;  %v2170_v40 = vrot.slane %v2169_v57, 2  ;;  %v1887_v7 = vrot.slane %v1886_v0, 2  ;;  %v2011_v8 = vadd.f32 %v2010_v58, %v2009_v54  ;;  %v1883_v17 = vadd.f32 %v1882_v14, %v1881_v18 }
 0x30b   : > { %v2161_v52 = vrot.slane %v2160_v3, 4  ;;  %v1940_v15 = vmul.f32 %v4621_v59, %v3267_v10  ;;  %v2084_v61 = vmul.f32 %v3267_v10, %v4622_v63  ;;  %v1896_v23 = vrot.slane %v1895_v44, 1 }
 0x30c   : > { %v4252_v30 = vadd.f32 %v2170_v40, %v2169_v57  ;;  %v1888_v20 = vadd.f32 %v1887_v7, %v1886_v0  ;;  %v2012_v41 = vrot.slane %v2011_v8, 2  ;;  %3270 = vrcp.f32 %v1883_v17 }
 0x30d   : > { %v2162_v56 = vadd.f32 %v2161_v52, %v2160_v3  ;;  %v2018_v11 = vadd.f32 %v2017_v2, %v2016_v34  ;;  %v2025_v46 = vadd.f32 %v2024_v6, %v2023_v21  ;;  %v1897_v50 = vadd.f32 %v1896_v23, %v1895_v44  ;;  %v4623_v2 = vld [vmem:[#allocation29_spill] sm:$0xff]  ;;  %v4624_v44 = vld [vmem:[#allocation30_spill] sm:$0xff] }
 0x30e   : > { %v1889_v45 = vrot.slane %v1888_v20, 1  ;;  %v2013_v12 = vadd.f32 %v2012_v41, %v2011_v8  ;;  %v4256_v54 = vmul.f32 %v4211_v35, %v4231_v48  ;;  %v4260_v18 = vmul.f32 %v4202_v49, %v4233_v38 }
 0x30f   : > { %v2163_v58 = vrot.slane %v2162_v56, 2  ;;  %v2019_v25 = vrot.slane %v2018_v11, 2  ;;  %v2026_v9 = vrot.slane %v2025_v46, 2  ;;  %3272 = vrcp.f32 %v1897_v50 }
 0x310   : > { %v1890_v5 = vadd.f32 %v1889_v45, %v1888_v20  ;;  %v2014_v1 = vrot.slane %v2013_v12, 1  ;;  %v4264_v21 = vmul.f32 %v4227_v42, %v4235_v4  ;;  %v2117_v48 = vadd.f32 %v2116_v62, %v4034_v31 }
 0x311   : > { %v2164_v6 = vadd.f32 %v2163_v58, %v2162_v56  ;;  %v2020_v34 = vadd.f32 %v2019_v25, %v2018_v11  ;;  %v2027_v53 = vadd.f32 %v2026_v9, %v2025_v46  ;;  %v2123_v38 = vrot.slane %v4055_v47, 1 }
 0x312   : > { %v3269_v36 = vpop.eup %3268  ;;  %3274 = vrcp.f32 %v1890_v5  ;;  %v2015_v57 = vadd.f32 %v2014_v1, %v2013_v12  ;;  %v2130_v0 = vrot.slane %v4161_v33, 1  ;;  %v2137_v31 = vrot.slane %v4172_v13, 1 }
 0x313   : > { %v1898_v14 = vadd.f32 %v3269_v36, %v3267_v10  ;;  %v1952_v3 = vmul.f32 %v4623_v2, %v3269_v36  ;;  %v2096_v4 = vmul.f32 %v3269_v36, %v4624_v44  ;;  %v2021_v40 = vrot.slane %v2020_v34, 1 }
 0x314   : > { %v2028_v7 = vrot.slane %v2027_v53, 1  ;;  %v2124_v8 = vadd.f32 %v2123_v38, %v4055_v47  ;;  %v2131_v17 = vadd.f32 %v2130_v0, %v4161_v33  ;;  %v2138_v20 = vadd.f32 %v2137_v31, %v4172_v13 }
 0x315   : > { %v1899_v62 = vrot.slane %v1898_v14, 4  ;;  %v2030_v52 = vadd.f32 %v1952_v3, %v1940_v15  ;;  %v2174_v59 = vadd.f32 %v2096_v4, %v2084_v61  ;;  %v2022_v63 = vadd.f32 %v2021_v40, %v2020_v34 }
 0x316   : > { %v2029_v23 = vadd.f32 %v2028_v7, %v2027_v53  ;;  %v2144_v10 = vrot.slane %v4165_v28, 1  ;;  %v2151_v41 = vrot.slane %v4200_v37, 1  ;;  %v3271_v56 = vpop.eup %3270  ;;  %v2158_v47 = vrot.slane %v4248_v24, 1 }
 0x317   : > { %v1900_v11 = vadd.f32 %v1899_v62, %v1898_v14  ;;  %v2031_v46 = vrot.slane %v2030_v52, 4  ;;  %v2175_v50 = vrot.slane %v2174_v59, 4  ;;  %v4280_v33 = vmul.f32 %v3271_v56, %v2015_v57 }
 0x318   : > { %v2145_v45 = vadd.f32 %v2144_v10, %v4165_v28  ;;  %v2152_v15 = vadd.f32 %v2151_v41, %v4200_v37  ;;  %v2165_v61 = vrot.slane %v2164_v6, 1  ;;  %v2159_v25 = vadd.f32 %v2158_v47, %v4248_v24 }
 0x319   : > { %v1901_v12 = vrot.slane %v1900_v11, 2  ;;  %v2176_v58 = vadd.f32 %v2175_v50, %v2174_v59  ;;  %v2032_v13 = vadd.f32 %v2031_v46, %v2030_v52  ;;  %v3273_v9 = vpop.eup %3272  ;;  %v2172_v1 = vrot.slane %v4252_v30, 1 }
 0x31a   : > { %v2166_v5 = vadd.f32 %v2165_v61, %v2164_v6  ;;  %v2181_v34 = vmul.f32 %v4053_v51, %v4216_v19  ;;  %v2182_v53 = vmul.f32 %v4072_v29, %v4222_v60  ;;  %v4290_v37 = vmul.f32 %v3273_v9, %v2029_v23 }
 0x31b   : > { %v1902_v36 = vadd.f32 %v1901_v12, %v1900_v11  ;;  %v2177_v28 = vrot.slane %v2176_v58, 2  ;;  %v2033_v57 = vrot.slane %v2032_v13, 2  ;;  %v2173_v0 = vadd.f32 %v2172_v1, %v4252_v30 }
 0x31c   : > { %v3275_v38 = vpop.eup %3274  ;;  %v2183_v24 = vmul.f32 %v4062_v27, %v2117_v48  ;;  %v2184_v6 = vmul.f32 %v4089_v55, %v2124_v8  ;;  %v2185_v14 = vmul.f32 %v4193_v16, %v2131_v17  ;;  %v2186_v29 = vmul.f32 %v4211_v35, %v2138_v20 }
 0x31d   : > { %v1903_v2 = vrot.slane %v1902_v36, 1  ;;  %v2178_v3 = vadd.f32 %v2177_v28, %v2176_v58  ;;  %v2034_v51 = vadd.f32 %v2033_v57, %v2032_v13  ;;  %v4296_v19 = vmul.f32 %v3275_v38, %v2022_v63 }
 0x31e   : > { %v2187_v60 = vmul.f32 %v4202_v49, %v2145_v45  ;;  %v2188_v44 = vmul.f32 %v4227_v42, %v2152_v15  ;;  %v2189_v4 = vmul.f32 %v3271_v56, %v2159_v25  ;;  %v2190_v30 = vmul.f32 %v3275_v38, %v2166_v5 }
 0x31f   : > { %v1904_v40 = vadd.f32 %v1903_v2, %v1902_v36  ;;  %v2191_v7 = vmul.f32 %v3273_v9, %v2173_v0  ;;  %v2193_v27 = vmul.f32 %v4120_v32, %v4120_v32  ;;  %v2194_v55 = vmul.f32 %v4125_v43, %v4125_v43 }
 0x320   : > { %v2195_v16 = vmul.f32 %v4206_v26, %v4206_v26  ;;  %v2035_v48 = vrot.slane %v2034_v51, 1  ;;  %v2179_v35 = vrot.slane %v2178_v3, 1  ;;  %v2196_v49 = vmul.f32 %v4209_v22, %v4209_v22 }
 0x321   : > { %3276 = vrcp.f32 %v1904_v40  ;;  %v2197_v42 = vmul.f32 %v4238_v39, %v4238_v39  ;;  %v2198_v8 = vmul.f32 %v4256_v54, %v4256_v54  ;;  %v2199_v17 = vmul.f32 %v4260_v18, %v4260_v18 }
 0x322   : > { %v2200_v31 = vmul.f32 %v4264_v21, %v4264_v21  ;;  %v2201_v62 = vmul.f32 %v4280_v33, %v4280_v33  ;;  %v2202_v52 = vmul.f32 %v4296_v19, %v4296_v19  ;;  %v2203_v59 = vmul.f32 %v4290_v37, %v4290_v37 }
 0x323   : > { %v2205_v63 = vsub.f32 %v2181_v34, %v2193_v27  ;;  %v2206_v23 = vsub.f32 %v2182_v53, %v2194_v55  ;;  %v2207_v20 = vsub.f32 %v2183_v24, %v2195_v16  ;;  %v2208_v10 = vsub.f32 %v2184_v6, %v2196_v49 }
 0x324   : > { %v2209_v41 = vsub.f32 %v2185_v14, %v2197_v42  ;;  %v2210_v56 = vsub.f32 %v2186_v29, %v2198_v8  ;;  %v2211_v11 = vsub.f32 %v2187_v60, %v2199_v17  ;;  %v2212_v46 = vsub.f32 %v2188_v44, %v2200_v31 }
 0x325   : > { %v2213_v50 = vsub.f32 %v2189_v4, %v2201_v62  ;;  %v2214_v47 = vsub.f32 %v2190_v30, %v2202_v52  ;;  %v2215_v45 = vsub.f32 %v2191_v7, %v2203_v59  ;;  %v4323_v15 = vmax.f32 %v2205_v63, 1e-09 }
 0x326   : > { %v4325_v61 = vmax.f32 %v2206_v23, 1e-09  ;;  %v4327_v12 = vmax.f32 %v2207_v20, 1e-09  ;;  %v4330_v58 = vmax.f32 %v2208_v10, 1e-09  ;;  %v2036_v13 = vadd.f32 %v2035_v48, %v2034_v51 }
 0x327   : > { %3278 = vrsqrt.f32 %v4323_v15  ;;  %v2180_v25 = vadd.f32 %v2179_v35, %v2178_v3  ;;  %v4333_v9 = vmax.f32 %v2209_v41, 1e-09  ;;  %v4335_v1 = vmax.f32 %v2210_v56, 1e-09 }
 0x328   : > { %3280 = vrsqrt.f32 %v4325_v61  ;;  %v4340_v36 = vmax.f32 %v2211_v11, 1e-09  ;;  %v4342_v28 = vmax.f32 %v2212_v46, 1e-09  ;;  %v4344_v57 = vmax.f32 %v2213_v50, 1e-09 }
 0x329   : > { %3282 = vrsqrt.f32 %v4327_v12  ;;  %v4346_v38 = vmax.f32 %v2214_v47, 1e-09  ;;  %v4348_v0 = vmax.f32 %v2215_v45, 1e-09  ;;  %vm2231_vm0 = vcmp.eq.f32.partialorder %v4323_v15, inf }
 0x32a   : > { %3284 = vrsqrt.f32 %v4330_v58  ;;  %vm2233_vm1 = vcmp.eq.f32.partialorder %v4323_v15, 0.0  ;;  %v2234_v6 = vand.u32 2147483648, %v4323_v15  ;;  %vm2238_vm2 = vcmp.eq.f32.partialorder %v4325_v61, inf }
 0x32b   : > { %v3277_v5 = vpop.eup %3276  ;;  %3286 = vrsqrt.f32 %v4333_v9  ;;  %vm2240_vm3 = vcmp.eq.f32.partialorder %v4325_v61, 0.0  ;;  %v2241_v2 = vand.u32 2147483648, %v4325_v61  ;;  %vm2245_vm4 = vcmp.eq.f32.partialorder %v4327_v12, inf }
 0x32c   : > { %v4338_v34 = vmul.f32 %v3277_v5, %v2036_v13  ;;  %v2192_v53 = vmul.f32 %v3277_v5, %v2180_v25  ;;  %3288 = vrsqrt.f32 %v4335_v1  ;;  %vm2247_vm5 = vcmp.eq.f32.partialorder %v4327_v12, 0.0 }
 0x32d   : > { %3290 = vrsqrt.f32 %v4340_v36  ;;  %v2248_v3 = vand.u32 2147483648, %v4327_v12  ;;  %vm2252_vm6 = vcmp.eq.f32.partialorder %v4330_v58, inf  ;;  %vm2254_vm7 = vcmp.eq.f32.partialorder %v4330_v58, 0.0 }
 0x32e   : > { %v2204_v24 = vmul.f32 %v4338_v34, %v4338_v34  ;;  %3292 = vrsqrt.f32 %v4342_v28  ;;  %v2255_v29 = vand.u32 2147483648, %v4330_v58  ;;  %vm2259_vm8 = vcmp.eq.f32.partialorder %v4333_v9, inf }
 0x32f   : > { %3294 = vrsqrt.f32 %v4344_v57  ;;  %vm2261_vm9 = vcmp.eq.f32.partialorder %v4333_v9, 0.0  ;;  %v2262_v40 = vand.u32 2147483648, %v4333_v9  ;;  %vm2266_vm10 = vcmp.eq.f32.partialorder %v4335_v1, inf }
 0x330   : > { %v2216_v14 = vsub.f32 %v2192_v53, %v2204_v24  ;;  %vm2268_vm11 = vcmp.eq.f32.partialorder %v4335_v1, 0.0  ;;  %v2269_v7 = vand.u32 2147483648, %v4335_v1  ;;  %vm2273_vm12 = vcmp.eq.f32.partialorder %v4340_v36, inf }
 0x331   : > { %v3279_v51 = vpop.eup %3278  ;;  %3296 = vrsqrt.f32 %v4346_v38  ;;  %vm2275_vm13 = vcmp.eq.f32.partialorder %v4340_v36, 0.0  ;;  %v2276_v16 = vand.u32 2147483648, %v4340_v36  ;;  %vm2282_vm15 = vcmp.eq.f32.partialorder %v4342_v28, 0.0 }
 0x332   : > { %v3281_v60 = vpop.eup %3280  ;;  %v4371_v44 = vmax.f32 %v2216_v14, 1e-09  ;;  %v2230_v4 = vmul.f32 %v3279_v51, %v4323_v15  ;;  %3298 = vrsqrt.f32 %v4348_v0  ;;  %v2283_v49 = vand.u32 2147483648, %v4342_v28 }
 0x333   : > { %v2237_v30 = vmul.f32 %v3281_v60, %v4325_v61  ;;  %v3283_v27 = vpop.eup %3282  ;;  %v2290_v31 = vand.u32 2147483648, %v4344_v57  ;;  %v2297_v63 = vand.u32 2147483648, %v4346_v38  ;;  %v2304_v23 = vand.u32 2147483648, %v4348_v0 }
 0x334   : > { %v2232_v55 = vsel %vm2231_vm0, %v4323_v15, %v2230_v4  ;;  %v2244_v35 = vmul.f32 %v3283_v27, %v4327_v12  ;;  %vm2287_vm0 = vcmp.eq.f32.partialorder %v4344_v57, inf  ;;  %v3285_v42 = vpop.eup %3284  ;;  %3300 = vrsqrt.f32 %v4371_v44 }
 0x335   : > { %v2239_v48 = vsel %vm2238_vm2, %v4325_v61, %v2237_v30  ;;  %v2235_v8 = vsel %vm2233_vm1, %v2234_v6, %v2232_v55  ;;  %v3287_v62 = vpop.eup %3286  ;;  %v2251_v59 = vmul.f32 %v3285_v42, %v4330_v58  ;;  %vm2294_vm2 = vcmp.eq.f32.partialorder %v4346_v38, inf }
 0x336   : > { %v2242_v17 = vsel %vm2240_vm3, %v2241_v2, %v2239_v48  ;;  %v2246_v52 = vsel %vm2245_vm4, %v4327_v12, %v2244_v35  ;;  %v3289_v20 = vpop.eup %3288  ;;  %v2258_v41 = vmul.f32 %v3287_v62, %v4333_v9  ;;  %vm2296_vm1 = vcmp.eq.f32.partialorder %v4346_v38, 0.0 }
 0x337   : > { %v2249_v10 = vsel %vm2247_vm5, %v2248_v3, %v2246_v52  ;;  %vm2301_vm3 = vcmp.eq.f32.partialorder %v4348_v0, inf  ;;  %v3291_v56 = vpop.eup %3290  ;;  %v2253_v11 = vsel %vm2252_vm6, %v4330_v58, %v2251_v59  ;;  %v2265_v46 = vmul.f32 %v3289_v20, %v4335_v1 }
 0x338   : > { %vm2303_vm4 = vcmp.eq.f32.partialorder %v4348_v0, 0.0  ;;  %v2314_v50 = vsel %vm2313_vm14, %v4120_v32, %v2235_v8  ;;  %v2315_v47 = vsel %vm2313_vm14, %v4125_v43, %v2242_v17  ;;  %v3293_v45 = vpop.eup %3292  ;;  %v2256_v15 = vsel %vm2254_vm7, %v2255_v29, %v2253_v11 }
 0x339   : > { %v2260_v61 = vsel %vm2259_vm8, %v4333_v9, %v2258_v41  ;;  %v2272_v12 = vmul.f32 %v3291_v56, %v4340_v36  ;;  %vm2308_vm5 = vcmp.eq.f32.partialorder %v4371_v44, inf  ;;  %v2316_v13 = vsel %vm2313_vm14, %v4206_v26, %v2249_v10  ;;  %v3295_v25 = vpop.eup %3294 }
 0x33a   : > { %v2263_v32 = vsel %vm2261_vm9, %v2262_v40, %v2260_v61  ;;  %v2267_v43 = vsel %vm2266_vm10, %v4335_v1, %v2265_v46  ;;  %v2279_v58 = vmul.f32 %v3293_v45, %v4342_v28  ;;  %v2317_v5 = vsel %vm2313_vm14, %v4209_v22, %v2256_v15 }
 0x33b   : > { %v2270_v53 = vsel %vm2268_vm11, %v2269_v7, %v2267_v43  ;;  %v2274_v26 = vsel %vm2273_vm12, %v4340_v36, %v2272_v12  ;;  %v2286_v24 = vmul.f32 %v3295_v25, %v4344_v57  ;;  %v2318_v9 = vsel %vm2313_vm14, %v4238_v39, %v2263_v32  ;;  %v3297_v6 = vpop.eup %3296 }
 0x33c   : > { %v2277_v14 = vsel %vm2275_vm13, %v2276_v16, %v2274_v26  ;;  %vm4625_vm6 = vcmp.eq.f32.partialorder %v4342_v28, inf  ;;  %v2319_v1 = vsel %vm2313_vm14, %v4256_v54, %v2270_v53  ;;  %v2338_v2 = vcombine.low %v2314_v50, %v2315_v47  ;;  %v3299_v3 = vpop.eup %3298 }
 0x33d   : > { %v2281_v22 = vsel %vm4625_vm6, %v4342_v28, %v2279_v58  ;;  %v2288_v39 = vsel %vm2287_vm0, %v4344_v57, %v2286_v24  ;;  %v2293_v29 = vmul.f32 %v3297_v6, %v4346_v38  ;;  %v2320_v36 = vsel %vm2313_vm14, %v4260_v18, %v2277_v14 }
 0x33e   : > { %v2284_v51 = vsel %vm2282_vm15, %v2283_v49, %v2281_v22  ;;  %vm4626_vm7 = vcmp.eq.f32.partialorder %v4344_v57, 0.0  ;;  %v2300_v4 = vmul.f32 %v3299_v3, %v4348_v0  ;;  %v2339_v28 = vcombine.low %v2316_v13, %v2317_v5  ;;  %v3301_v40 = vpop.eup %3300 }
 0x33f   : > { %v2291_v60 = vsel %vm4626_vm7, %v2290_v31, %v2288_v39  ;;  %v2321_v54 = vsel %vm2313_vm14, %v4264_v21, %v2284_v51  ;;  %v2295_v30 = vsel %vm2294_vm2, %v4346_v38, %v2293_v29  ;;  %v3492_v27 = vmov 1983009808   ;;  %v4627_v31 = vld [vmem:[#allocation12_spill] sm:$0xff] }
 0x340   : > { %v2322_v7 = vsel %vm2313_vm14, %v4280_v33, %v2291_v60  ;;  %v2341_v18 = vunpack.c.l.s4 %v3492_v27  ;;  %v2355_v55 = vcombine.low %v2318_v9, %v2319_v1  ;;  %v2298_v57 = vsel %vm2296_vm1, %v2297_v63, %v2295_v30 }
 0x341   : > { %v2302_v21 = vsel %vm2301_vm3, %v4348_v0, %v2300_v4  ;;  %v2307_v16 = vmul.f32 %v3301_v40, %v4371_v44  ;;  %v2356_v48 = vcombine.low %v2320_v36, %v2321_v54  ;;  %v2311_v49 = vand.u32 2147483648, %v4371_v44 }
 0x342   : > { %v2305_v35 = vsel %vm2303_vm4, %v2304_v23, %v2302_v21  ;;  %v2323_v33 = vsel %vm2313_vm14, %v4296_v19, %v2298_v57  ;;  %v2342_v42 = vunpack.c.0.s8 %v2341_v18  ;;  %vm2310_vm8 = vcmp.eq.f32.partialorder %v4371_v44, 0.0 }
 0x343   : > { %v2309_v38 = vsel %vm2308_vm5, %v4371_v44, %v2307_v16  ;;  %v2324_v8 = vsel %vm2313_vm14, %v4290_v37, %v2305_v35  ;;  %v2372_v17 = vcombine.low %v2322_v7, %v2323_v33 }
 0x344   : > { %v2312_v0 = vsel %vm2310_vm8, %v2311_v49, %v2309_v38  ;;  %v2345_v62 = vsub.s32 %v2342_v42, %v4627_v31 }
 0x345   : > { %v2325_v52 = vsel %vm2313_vm14, %v4338_v34, %v2312_v0 }
 0x346   : > { %v2346_v19 = vrot.slane %v2338_v2, %v2345_v62  ;;  %v2353_v59 = vrot.slane %v2339_v28, %v2345_v62  ;;  %v2363_v63 = vrot.slane %v2355_v55, %v2345_v62  ;;  %v2370_v23 = vrot.slane %v2356_v48, %v2345_v62 }
 0x347   : > { %v2373_v20 = vcombine.low %v2324_v8, %v2325_v52  ;;  %v2380_v10 = vrot.slane %v2372_v17, %v2345_v62 }
 0x348   : > { %v2354_v44 = vcombine.low %v2346_v19, %v2353_v59  ;;  %v2371_v41 = vcombine.low %v2363_v63, %v2370_v23 }
 0x349   : > { %v2387_v37 = vrot.slane %v2373_v20, %v2345_v62 }
 0x34a   : > { %2392 = vst [vmem:[%s271_s7] sm:$0xff] %v2354_v44  ;;  %2393 = vst [vmem:[%s271_s7 + $0x8] sm:$0xff] %v2371_v41 }
 0x34b   : > { %v2388_v56 = vcombine.low %v2380_v10, %v2387_v37 }
 0x34d   : > { %2394 = vst [vmem:[%s271_s7 + $0x10] sm:$0xff] %v2388_v56 }
 0x34e   : > { %3425 = shalt.err (!%p3422_p7)
}
 0x34f   : > { %s3426_s23 = scalar_lea.hbm %s4499_s6, 384  ;;  %s3430_s11 = scalar_lea.hbm %s4547_s5, 1536 }
 0x350   : > { %p3427_p9 = scmp.ne.s32.totalorder %s4499_s6, %s3426_s23  ;;  %p3431_p5 = scmp.lt.u32.totalorder %s4499_s6, %s4547_s5 }
 0x351   : > { %p3432_p10 = scmp.lt.u32.totalorder %s3430_s11, %s3426_s23  ;;  %p3434_p1 = scmp.lt.u32.totalorder %s3426_s23, %s4499_s6 }
 0x352   : > { %p3428_p12 = pnand %p3427_p9, %p3642_p6 }
 0x353   : > { %p3433_p11 = por %p3432_p10, %p3431_p5 }
 0x354   : > { %p3429_p0 = pneg %p3428_p12 }
 0x355   : > { %p3435_p2 = por %p3434_p1, %p3433_p11 }
 0x357   : > { %p3436_p4 = pnand %p3435_p2, %p3429_p0 }
 0x359   : > { %3439 = shalt.err (!%p3436_p4)
}
 0x35a   : > { %3139 = dma.vmem_to_hbm [thread:$0]  (%p3642_p6), %s4501_s28, 384, %s4499_s6, %s2396_s22  }
 0x35b PF: > { %p3161_p8 = scmp.ge.s32.totalorder %s3482_s21, 2  ;;  %s2422_s30 = sand.u32 1, %s3470_s18  }
 0x35c   : > { %p4628_p13 = scmp.ne.s32.totalorder %s4566_s25, 0  ;;  %s2423_s7 = scalar_lea.sflag [#allocation4], %s2422_s30 }
 0x35e   : > { %p3153_p3 = pnand %p3161_p8, %p4628_p13 }
 0x360   : > { %3465 = dma.done.wait (!%p3153_p3), %s2423_s7, 384  }
 0x361   : > { %3467 = vsyncadd (!%p3153_p3), %s2423_s7, 4294966912  ;;  %p19_p7 = scmp.ge.s32.totalorder %s3629_s16, 6   ;;  %s4629_s18 = smov %s3474_s19 }
 0x362   : > { %s4630_s19 = smov %s3478_s20  ;;  %s4631_s20 = smov %s3638_s27 }
 0x363   : > { %s4632_s21 = smov %s3629_s16  ;;  %21 = sbr.rel (!%p19_p7) target bundleno = 6 (0x6), region = 93 }
 0x36a   :  { %2428 = vsyncpa [#allocation3], 1 }
 0x36b   :  { %2430 = vsyncpa [#allocation3 + $0x1], 1 }
 0x36c   :  { %2431 = vsyncpa [#allocation6], 1 }
 0x36d   :  { %2432 = vsyncpa [#allocation4], 1 }
 0x36e   :  { %2434 = vsyncpa [#allocation4 + $0x1], 1 }

</bundles_post_ra>
